<compile_context>
chip_gen: v5e
topology: v5e:2x2
jax: 0.10.0
libtpu: 0.0.40
codegen_flags: <defaults>
</compile_context>

<pallas_src>
import math
import functools

import jax
import jax.numpy as jnp
from jax.experimental import pallas as pl
from jax.experimental.pallas import tpu as pltpu


# ---------------- in-kernel math helpers --------------------------------------

def _bn_block(h, gamma, beta, eps=1e-5):
    """Training-mode BN over the whole block (the block == one virtual batch)."""
    mean = jnp.mean(h, axis=0, keepdims=True)
    diff = h - mean
    var = jnp.mean(diff * diff, axis=0, keepdims=True)
    return diff * jax.lax.rsqrt(var + eps) * gamma + beta


def _sparsemax_rows(z):
    """Sparsemax along the last dim (matches torch sort-based code, tie-free)."""
    z = z - jnp.max(z, axis=-1, keepdims=True)
    zi = z[:, :, None]                       # (rows, D, 1)
    zj = z[:, None, :]                       # (rows, 1, D)
    geq = (zj >= zi).astype(z.dtype)         # (rows, D, D)
    r = jnp.sum(geq, axis=-1)                # rank_i = #{j : z_j >= z_i}
    csum = jnp.sum(geq * zj, axis=-1)        # sum_{z_j >= z_i} z_j
    support = (1.0 + r * z) > csum
    k = jnp.max(jnp.where(support, r, 0.0), axis=-1, keepdims=True)
    ssum = jnp.sum(jnp.where(support, z, 0.0), axis=-1, keepdims=True)
    tau = (ssum - 1.0) / k
    return jnp.maximum(z - tau, 0.0)


# ---------------- Pallas kernel -----------------------------------------------

def decision_step_kernel(out_dim, inp_dim,
                         x_ref, a_ref, priors_ref,
                         at_w_ref, at_gb_ref, glu_w_ref, glu_gb_ref,
                         out_ref):
    x = x_ref[...]                  # (vbs, inp_dim)
    a = a_ref[...]                  # (vbs, d_a)
    priors = priors_ref[...]        # (vbs, inp_dim)
    at_gb = at_gb_ref[...]          # (2, inp_dim): [gamma; beta]

    # ---- AttentiveTransformer: mask = sparsemax(GBN(Linear(a)) * priors) ----
    # Linear bias omitted: it cancels exactly in (h - mean) of training-mode BN.
    h = jnp.dot(a, at_w_ref[...], preferred_element_type=jnp.float32)
    h = _bn_block(h, at_gb[0:1, :], at_gb[1:2, :])
    mask = _sparsemax_rows(h * priors)
    # (torch updates priors *= (relax - mask) locally; DecisionStep discards it)

    # ---- FeatureTransformer on x * mask (4 GLUs, residual * sqrt(0.5)) ----
    def glu(v, i, in_dim):
        w_pair = glu_w_ref[i]                     # (2, kmax, out_dim)
        w_v, w_g = w_pair[0], w_pair[1]           # value / gate halves
        gb = glu_gb_ref[i]                        # (4, out_dim): gv, bv, gg, bg
        if in_dim < w_v.shape[0]:                 # static; no-op when inp==out
            v = jnp.pad(v, ((0, 0), (0, w_v.shape[0] - in_dim)))
        hv = _bn_block(jnp.dot(v, w_v, preferred_element_type=jnp.float32),
                       gb[0:1, :], gb[1:2, :])
        hg = _bn_block(jnp.dot(v, w_g, preferred_element_type=jnp.float32),
                       gb[2:3, :], gb[3:4, :])
        return hv * jax.nn.sigmoid(hg)

    scale = jnp.float32(math.sqrt(0.5))
    y = glu(x * mask, 0, inp_dim)
    for i in (1, 2, 3):
        y = (y + glu(y, i, out_dim)) * scale

    # single lane-dense store; wrapper splits into (y, mask)
    out_ref[...] = jnp.concatenate([y, mask], axis=-1)


# ---------------- host-side parameter packing ----------------------------------

def pack_params(params, inp_dim, out_dim):
    """Pack per-layer params into 4 arrays; drop BN-cancelled Linear biases."""
    kmax = max(inp_dim, out_dim)
    at_gb = jnp.concatenate([params["at_g"], params["at_bt"]], axis=0)  # (2, inp)
    glu_w, glu_gb = [], []
    for i in range(4):
        w = params[f"g{i}_w"]                       # (in_i, 2*out_dim)
        wv, wg = w[:, :out_dim], w[:, out_dim:]     # value / gate halves
        pad = kmax - w.shape[0]
        if pad:
            wv = jnp.pad(wv, ((0, pad), (0, 0)))
            wg = jnp.pad(wg, ((0, pad), (0, 0)))
        glu_w.append(jnp.stack([wv, wg], axis=0))   # (2, kmax, out_dim)
        g = params[f"g{i}_g"][0]
        b = params[f"g{i}_bt"][0]
        glu_gb.append(jnp.stack([g[:out_dim], b[:out_dim],
                                 g[out_dim:], b[out_dim:]], axis=0))  # (4, out_dim)
    return {
        "at_w": params["at_w"],                  # (d_a, inp_dim)
        "at_gb": at_gb,                          # (2, inp_dim)
        "glu_w": jnp.stack(glu_w, axis=0),       # (4, 2, kmax, out_dim)
        "glu_gb": jnp.stack(glu_gb, axis=0),     # (4, 4, out_dim)
    }


# ---------------- wrapper ------------------------------------------------------

def decision_step(x, a, priors, params, vbs):
    B, inp_dim = x.shape
    d_a = a.shape[1]
    out_dim = params["g0_w"].shape[1] // 2
    kmax = max(inp_dim, out_dim)

    # TODO(synk): remainder virtual batches (B % vbs != 0) and vbs not a multiple
    # of 8 (unless vbs == B) are not supported by this block layout.
    assert B % vbs == 0, "B must be a multiple of vbs"
    assert vbs % 8 == 0 or vbs == B, "vbs must be a multiple of 8 (or == B)"
    n_chunks = B // vbs

    packed = pack_params(params, inp_dim, out_dim)
    kernel = functools.partial(decision_step_kernel, out_dim, inp_dim)

    out = pl.pallas_call(
        kernel,
        out_shape=jax.ShapeDtypeStruct((B, out_dim + inp_dim), jnp.float32),
        grid=(n_chunks,),
        in_specs=[
            pl.BlockSpec((vbs, inp_dim), lambda c: (c, 0)),          # x
            pl.BlockSpec((vbs, d_a), lambda c: (c, 0)),              # a
            pl.BlockSpec((vbs, inp_dim), lambda c: (c, 0)),          # priors
            pl.BlockSpec((d_a, inp_dim), lambda c: (0, 0)),          # at_w
            pl.BlockSpec((2, inp_dim), lambda c: (0, 0)),            # at_gb
            pl.BlockSpec((4, 2, kmax, out_dim), lambda c: (0, 0, 0, 0)),  # glu_w
            pl.BlockSpec((4, 4, out_dim), lambda c: (0, 0, 0)),      # glu_gb
        ],
        out_specs=pl.BlockSpec((vbs, out_dim + inp_dim), lambda c: (c, 0)),
        compiler_params=pltpu.CompilerParams(
            dimension_semantics=("parallel",)),
    )(x, a, priors,
      packed["at_w"], packed["at_gb"], packed["glu_w"], packed["glu_gb"])

    return out[:, :out_dim], out[:, out_dim:]


# ---------------- deterministic parameter init (PyTorch-style uniform) ---------

def init_params(key, inp_dim, d_d, d_a):
    out_dim = d_d + d_a
    ks = jax.random.split(key, 10)

    def linear(kw, kb, fan_in, fan_out):
        bound = 1.0 / math.sqrt(fan_in)
        w_t = jax.random.uniform(kw, (fan_in, fan_out), jnp.float32, -bound, bound)
        b = jax.random.uniform(kb, (1, fan_out), jnp.float32, -bound, bound)
        return w_t, b

    params = {}
    # AttentiveTransformer: Linear(d_a, inp_dim) + BN(inp_dim)
    params["at_w"], params["at_b"] = linear(ks[0], ks[1], d_a, inp_dim)
    params["at_g"] = jnp.ones((1, inp_dim), jnp.float32)
    params["at_bt"] = jnp.zeros((1, inp_dim), jnp.float32)

    # 4 GLUs: 2 shared (first takes inp_dim) + 2 dependent; Linear(*, 2*out) + BN
    in_dims = [inp_dim, out_dim, out_dim, out_dim]
    for i, di in enumerate(in_dims):
        w_t, b = linear(ks[2 + 2 * i], ks[3 + 2 * i], di, 2 * out_dim)
        params[f"g{i}_w"] = w_t
        params[f"g{i}_b"] = b
        params[f"g{i}_g"] = jnp.ones((1, 2 * out_dim), jnp.float32)
        params[f"g{i}_bt"] = jnp.zeros((1, 2 * out_dim), jnp.float32)
    return params


# ---------------- pure-JAX reference (PyTorch-faithful, keeps biases) -----------

def _gbn_ref(h, gamma, beta, vbs, eps=1e-5):
    B, D = h.shape
    hc = h.reshape(B // vbs, vbs, D)
    mean = jnp.mean(hc, axis=1, keepdims=True)
    diff = hc - mean
    var = jnp.mean(diff * diff, axis=1, keepdims=True)
    return (diff * jax.lax.rsqrt(var + eps)).reshape(B, D) * gamma + beta


def decision_step_ref(x, a, priors, params, vbs):
    out_dim = params["g0_w"].shape[1] // 2
    h = a @ params["at_w"] + params["at_b"]
    h = _gbn_ref(h, params["at_g"], params["at_bt"], vbs)
    mask = _sparsemax_rows(h * priors)

    def glu(v, i):
        hh = v @ params[f"g{i}_w"] + params[f"g{i}_b"]
        hh = _gbn_ref(hh, params[f"g{i}_g"], params[f"g{i}_bt"], vbs)
        return hh[:, :out_dim] * jax.nn.sigmoid(hh[:, out_dim:])

    scale = jnp.sqrt(jnp.float32(0.5))
    y = glu(x * mask, 0)
    for i in (1, 2, 3):
        y = (y + glu(y, i)) * scale
    return y, mask


if __name__ == "__main__":
    B, inp_dim, d_d, d_a, vbs = 16, 16, 8, 8, 8   # 2 virtual batches of 8

    key = jax.random.PRNGKey(0)
    kx, ka, kparams = jax.random.split(key, 3)
    x = jax.random.normal(kx, (B, inp_dim), jnp.float32)
    a = jax.random.normal(ka, (B, d_a), jnp.float32)
    priors = jnp.ones((B, inp_dim), jnp.float32)
    params = init_params(kparams, inp_dim, d_d, d_a)

    out_x, mask = decision_step(x, a, priors, params, vbs)
    jax.block_until_ready((out_x, mask))

    ref_x, ref_mask = decision_step_ref(x, a, priors, params, vbs)
    assert out_x.shape == (B, d_d + d_a) and mask.shape == (B, inp_dim)
    assert jnp.allclose(mask.sum(-1), 1.0, atol=1e-4), "sparsemax rows must sum to 1"
    assert jnp.allclose(out_x, ref_x, atol=1e-4, rtol=1e-4)
    assert jnp.allclose(mask, ref_mask, atol=1e-4, rtol=1e-4)

    print("KERNEL_OK")
</pallas_src>

<mosaic_0001>
module attributes {stable_mosaic.version = 11 : i64} {
  func.func @decision_step_kernel(%arg0: i32, %arg1: memref<8x16xf32, #tpu.memory_space<vmem>>, %arg2: memref<8x8xf32, #tpu.memory_space<vmem>>, %arg3: memref<8x16xf32, #tpu.memory_space<vmem>>, %arg4: memref<8x16xf32, #tpu.memory_space<vmem>>, %arg5: memref<2x16xf32, #tpu.memory_space<vmem>>, %arg6: memref<4x2x16x16xf32, #tpu.memory_space<vmem>>, %arg7: memref<4x4x16xf32, #tpu.memory_space<vmem>>, %arg8: memref<8x32xf32, #tpu.memory_space<vmem>>) attributes {dimension_semantics = [#tpu.dimension_semantics<parallel>], iteration_bounds = array<i64: 2>, scalar_prefetch = 0 : i64, scratch_operands = 0 : i64, tpu.core_type = #tpu.core_type<tc>, window_params = [{transform_indices = @transform_0, window_bounds = array<i64: 8, 16>}, {transform_indices = @transform_1, window_bounds = array<i64: 8, 8>}, {transform_indices = @transform_2, window_bounds = array<i64: 8, 16>}, {pipeline_mode = #tpu.pipeline_mode<synchronous>, transform_indices = @transform_3, window_bounds = array<i64: 8, 16>}, {pipeline_mode = #tpu.pipeline_mode<synchronous>, transform_indices = @transform_4, window_bounds = array<i64: 2, 16>}, {pipeline_mode = #tpu.pipeline_mode<synchronous>, transform_indices = @transform_5, window_bounds = array<i64: 4, 2, 16, 16>}, {pipeline_mode = #tpu.pipeline_mode<synchronous>, transform_indices = @transform_6, window_bounds = array<i64: 4, 4, 16>}, {transform_indices = @transform_7, window_bounds = array<i64: 8, 32>}]} {
    %c0 = arith.constant 0 : index
    %c0_0 = arith.constant 0 : index
    %0 = vector.load %arg1[%c0, %c0_0] : memref<8x16xf32, #tpu.memory_space<vmem>>, vector<8x16xf32>
    %c0_1 = arith.constant 0 : index
    %c0_2 = arith.constant 0 : index
    %1 = vector.load %arg2[%c0_1, %c0_2] : memref<8x8xf32, #tpu.memory_space<vmem>>, vector<8x8xf32>
    %c0_3 = arith.constant 0 : index
    %c0_4 = arith.constant 0 : index
    %2 = vector.load %arg3[%c0_3, %c0_4] : memref<8x16xf32, #tpu.memory_space<vmem>>, vector<8x16xf32>
    %c0_5 = arith.constant 0 : index
    %c0_6 = arith.constant 0 : index
    %3 = vector.load %arg5[%c0_5, %c0_6] : memref<2x16xf32, #tpu.memory_space<vmem>>, vector<2x16xf32>
    %c0_7 = arith.constant 0 : index
    %c0_8 = arith.constant 0 : index
    %4 = vector.load %arg4[%c0_7, %c0_8] : memref<8x16xf32, #tpu.memory_space<vmem>>, vector<8x16xf32>
    %cst = arith.constant dense<0.000000e+00> : vector<8x16xf32>
    %5 = tpu.matmul %1, %4, %cst {dimension_numbers = #tpu.dot_dimension_numbers<[1], [0], [0], [1], [0, 0, 1, 1], [], []>} : vector<8x8xf32>, vector<8x16xf32>, vector<8x16xf32> -> vector<8x16xf32>
    %6 = vector.extract_strided_slice %3 {offsets = [0, 0], sizes = [1, 16], strides = [1, 1]} : vector<2x16xf32> to vector<1x16xf32>
    %7 = vector.extract_strided_slice %3 {offsets = [1, 0], sizes = [1, 16], strides = [1, 1]} : vector<2x16xf32> to vector<1x16xf32>
    %cst_9 = arith.constant dense<0.000000e+00> : vector<16xf32>
    %8 = vector.multi_reduction <add>, %5, %cst_9 [0] : vector<8x16xf32> to vector<16xf32>
    %9 = vector.shape_cast %8 : vector<16xf32> to vector<1x16xf32>
    %cst_10 = arith.constant 8.000000e+00 : f32
    %10 = vector.broadcast %cst_10 : f32 to vector<1x16xf32>
    %11 = arith.divf %9, %10 : vector<1x16xf32>
    %12 = vector.broadcast %11 : vector<1x16xf32> to vector<8x16xf32>
    %13 = arith.subf %5, %12 : vector<8x16xf32>
    %14 = arith.mulf %13, %13 : vector<8x16xf32>
    %cst_11 = arith.constant dense<0.000000e+00> : vector<16xf32>
    %15 = vector.multi_reduction <add>, %14, %cst_11 [0] : vector<8x16xf32> to vector<16xf32>
    %16 = vector.shape_cast %15 : vector<16xf32> to vector<1x16xf32>
    %cst_12 = arith.constant 8.000000e+00 : f32
    %17 = vector.broadcast %cst_12 : f32 to vector<1x16xf32>
    %18 = arith.divf %16, %17 : vector<1x16xf32>
    %cst_13 = arith.constant 9.99999974E-6 : f32
    %19 = vector.broadcast %cst_13 : f32 to vector<1x16xf32>
    %20 = arith.addf %18, %19 : vector<1x16xf32>
    %21 = math.rsqrt %20 : vector<1x16xf32>
    %22 = vector.broadcast %21 : vector<1x16xf32> to vector<8x16xf32>
    %23 = arith.mulf %13, %22 : vector<8x16xf32>
    %24 = vector.broadcast %6 : vector<1x16xf32> to vector<8x16xf32>
    %25 = arith.mulf %23, %24 : vector<8x16xf32>
    %26 = vector.broadcast %7 : vector<1x16xf32> to vector<8x16xf32>
    %27 = arith.addf %25, %26 : vector<8x16xf32>
    %28 = arith.mulf %27, %2 : vector<8x16xf32>
    %cst_14 = arith.constant dense<0xFF800000> : vector<8xf32>
    %29 = vector.multi_reduction <maximumf>, %28, %cst_14 [1] : vector<8x16xf32> to vector<8xf32>
    %30 = vector.shape_cast %29 : vector<8xf32> to vector<8x1xf32>
    %31 = vector.broadcast %30 : vector<8x1xf32> to vector<8x16xf32>
    %32 = arith.subf %28, %31 : vector<8x16xf32>
    %33 = vector.shape_cast %32 : vector<8x16xf32> to vector<8x16x1xf32>
    %34 = vector.shape_cast %32 : vector<8x16xf32> to vector<8x1x16xf32>
    %35 = vector.broadcast %34 : vector<8x1x16xf32> to vector<8x16x16xf32>
    %36 = vector.broadcast %33 : vector<8x16x1xf32> to vector<8x16x16xf32>
    %37 = arith.cmpf oge, %35, %36 : vector<8x16x16xf32>
    %38 = arith.extui %37 : vector<8x16x16xi1> to vector<8x16x16xi32>
    %39 = arith.sitofp %38 : vector<8x16x16xi32> to vector<8x16x16xf32>
    %cst_15 = arith.constant dense<0.000000e+00> : vector<8x16xf32>
    %40 = vector.multi_reduction <add>, %39, %cst_15 [2] : vector<8x16x16xf32> to vector<8x16xf32>
    %41 = vector.broadcast %34 : vector<8x1x16xf32> to vector<8x16x16xf32>
    %42 = arith.mulf %39, %41 : vector<8x16x16xf32>
    %cst_16 = arith.constant dense<0.000000e+00> : vector<8x16xf32>
    %43 = vector.multi_reduction <add>, %42, %cst_16 [2] : vector<8x16x16xf32> to vector<8x16xf32>
    %44 = arith.mulf %40, %32 : vector<8x16xf32>
    %cst_17 = arith.constant 1.000000e+00 : f32
    %45 = vector.broadcast %cst_17 : f32 to vector<8x16xf32>
    %46 = arith.addf %45, %44 : vector<8x16xf32>
    %47 = arith.cmpf ogt, %46, %43 : vector<8x16xf32>
    %cst_18 = arith.constant 0.000000e+00 : f32
    %48 = vector.broadcast %cst_18 : f32 to vector<8x16xf32>
    %49 = arith.select %47, %40, %48 : vector<8x16xi1>, vector<8x16xf32>
    %cst_19 = arith.constant dense<0xFF800000> : vector<8xf32>
    %50 = vector.multi_reduction <maximumf>, %49, %cst_19 [1] : vector<8x16xf32> to vector<8xf32>
    %51 = vector.shape_cast %50 : vector<8xf32> to vector<8x1xf32>
    %cst_20 = arith.constant 0.000000e+00 : f32
    %52 = vector.broadcast %cst_20 : f32 to vector<8x16xf32>
    %53 = arith.select %47, %32, %52 : vector<8x16xi1>, vector<8x16xf32>
    %cst_21 = arith.constant dense<0.000000e+00> : vector<8xf32>
    %54 = vector.multi_reduction <add>, %53, %cst_21 [1] : vector<8x16xf32> to vector<8xf32>
    %55 = vector.shape_cast %54 : vector<8xf32> to vector<8x1xf32>
    %cst_22 = arith.constant 1.000000e+00 : f32
    %56 = vector.broadcast %cst_22 : f32 to vector<8x1xf32>
    %57 = arith.subf %55, %56 : vector<8x1xf32>
    %58 = arith.divf %57, %51 : vector<8x1xf32>
    %59 = vector.broadcast %58 : vector<8x1xf32> to vector<8x16xf32>
    %60 = arith.subf %32, %59 : vector<8x16xf32>
    %cst_23 = arith.constant 0.000000e+00 : f32
    %61 = vector.broadcast %cst_23 : f32 to vector<8x16xf32>
    %62 = arith.maximumf %60, %61 : vector<8x16xf32>
    %63 = arith.mulf %0, %62 : vector<8x16xf32>
    %c0_24 = arith.constant 0 : index
    %c0_25 = arith.constant 0 : index
    %c0_26 = arith.constant 0 : index
    %c0_27 = arith.constant 0 : index
    %64 = vector.load %arg6[%c0_24, %c0_25, %c0_26, %c0_27] : memref<4x2x16x16xf32, #tpu.memory_space<vmem>>, vector<1x2x16x16xf32>
    %65 = vector.shape_cast %64 : vector<1x2x16x16xf32> to vector<2x16x16xf32>
    %66 = vector.extract_strided_slice %65 {offsets = [0, 0, 0], sizes = [1, 16, 16], strides = [1, 1, 1]} : vector<2x16x16xf32> to vector<1x16x16xf32>
    %67 = vector.shape_cast %66 : vector<1x16x16xf32> to vector<16x16xf32>
    %68 = vector.extract_strided_slice %65 {offsets = [1, 0, 0], sizes = [1, 16, 16], strides = [1, 1, 1]} : vector<2x16x16xf32> to vector<1x16x16xf32>
    %69 = vector.shape_cast %68 : vector<1x16x16xf32> to vector<16x16xf32>
    %c0_28 = arith.constant 0 : index
    %c0_29 = arith.constant 0 : index
    %c0_30 = arith.constant 0 : index
    %70 = vector.load %arg7[%c0_28, %c0_29, %c0_30] : memref<4x4x16xf32, #tpu.memory_space<vmem>>, vector<1x4x16xf32>
    %71 = vector.shape_cast %70 : vector<1x4x16xf32> to vector<4x16xf32>
    %cst_31 = arith.constant dense<0.000000e+00> : vector<8x16xf32>
    %72 = tpu.matmul %63, %67, %cst_31 {dimension_numbers = #tpu.dot_dimension_numbers<[1], [0], [0], [1], [0, 0, 1, 1], [], []>} : vector<8x16xf32>, vector<16x16xf32>, vector<8x16xf32> -> vector<8x16xf32>
    %73 = vector.extract_strided_slice %71 {offsets = [0, 0], sizes = [1, 16], strides = [1, 1]} : vector<4x16xf32> to vector<1x16xf32>
    %74 = vector.extract_strided_slice %71 {offsets = [1, 0], sizes = [1, 16], strides = [1, 1]} : vector<4x16xf32> to vector<1x16xf32>
    %cst_32 = arith.constant dense<0.000000e+00> : vector<16xf32>
    %75 = vector.multi_reduction <add>, %72, %cst_32 [0] : vector<8x16xf32> to vector<16xf32>
    %76 = vector.shape_cast %75 : vector<16xf32> to vector<1x16xf32>
    %cst_33 = arith.constant 8.000000e+00 : f32
    %77 = vector.broadcast %cst_33 : f32 to vector<1x16xf32>
    %78 = arith.divf %76, %77 : vector<1x16xf32>
    %79 = vector.broadcast %78 : vector<1x16xf32> to vector<8x16xf32>
    %80 = arith.subf %72, %79 : vector<8x16xf32>
    %81 = arith.mulf %80, %80 : vector<8x16xf32>
    %cst_34 = arith.constant dense<0.000000e+00> : vector<16xf32>
    %82 = vector.multi_reduction <add>, %81, %cst_34 [0] : vector<8x16xf32> to vector<16xf32>
    %83 = vector.shape_cast %82 : vector<16xf32> to vector<1x16xf32>
    %cst_35 = arith.constant 8.000000e+00 : f32
    %84 = vector.broadcast %cst_35 : f32 to vector<1x16xf32>
    %85 = arith.divf %83, %84 : vector<1x16xf32>
    %cst_36 = arith.constant 9.99999974E-6 : f32
    %86 = vector.broadcast %cst_36 : f32 to vector<1x16xf32>
    %87 = arith.addf %85, %86 : vector<1x16xf32>
    %88 = math.rsqrt %87 : vector<1x16xf32>
    %89 = vector.broadcast %88 : vector<1x16xf32> to vector<8x16xf32>
    %90 = arith.mulf %80, %89 : vector<8x16xf32>
    %91 = vector.broadcast %73 : vector<1x16xf32> to vector<8x16xf32>
    %92 = arith.mulf %90, %91 : vector<8x16xf32>
    %93 = vector.broadcast %74 : vector<1x16xf32> to vector<8x16xf32>
    %94 = arith.addf %92, %93 : vector<8x16xf32>
    %cst_37 = arith.constant dense<0.000000e+00> : vector<8x16xf32>
    %95 = tpu.matmul %63, %69, %cst_37 {dimension_numbers = #tpu.dot_dimension_numbers<[1], [0], [0], [1], [0, 0, 1, 1], [], []>} : vector<8x16xf32>, vector<16x16xf32>, vector<8x16xf32> -> vector<8x16xf32>
    %96 = vector.extract_strided_slice %71 {offsets = [2, 0], sizes = [1, 16], strides = [1, 1]} : vector<4x16xf32> to vector<1x16xf32>
    %97 = vector.extract_strided_slice %71 {offsets = [3, 0], sizes = [1, 16], strides = [1, 1]} : vector<4x16xf32> to vector<1x16xf32>
    %cst_38 = arith.constant dense<0.000000e+00> : vector<16xf32>
    %98 = vector.multi_reduction <add>, %95, %cst_38 [0] : vector<8x16xf32> to vector<16xf32>
    %99 = vector.shape_cast %98 : vector<16xf32> to vector<1x16xf32>
    %cst_39 = arith.constant 8.000000e+00 : f32
    %100 = vector.broadcast %cst_39 : f32 to vector<1x16xf32>
    %101 = arith.divf %99, %100 : vector<1x16xf32>
    %102 = vector.broadcast %101 : vector<1x16xf32> to vector<8x16xf32>
    %103 = arith.subf %95, %102 : vector<8x16xf32>
    %104 = arith.mulf %103, %103 : vector<8x16xf32>
    %cst_40 = arith.constant dense<0.000000e+00> : vector<16xf32>
    %105 = vector.multi_reduction <add>, %104, %cst_40 [0] : vector<8x16xf32> to vector<16xf32>
    %106 = vector.shape_cast %105 : vector<16xf32> to vector<1x16xf32>
    %cst_41 = arith.constant 8.000000e+00 : f32
    %107 = vector.broadcast %cst_41 : f32 to vector<1x16xf32>
    %108 = arith.divf %106, %107 : vector<1x16xf32>
    %cst_42 = arith.constant 9.99999974E-6 : f32
    %109 = vector.broadcast %cst_42 : f32 to vector<1x16xf32>
    %110 = arith.addf %108, %109 : vector<1x16xf32>
    %111 = math.rsqrt %110 : vector<1x16xf32>
    %112 = vector.broadcast %111 : vector<1x16xf32> to vector<8x16xf32>
    %113 = arith.mulf %103, %112 : vector<8x16xf32>
    %114 = vector.broadcast %96 : vector<1x16xf32> to vector<8x16xf32>
    %115 = arith.mulf %113, %114 : vector<8x16xf32>
    %116 = vector.broadcast %97 : vector<1x16xf32> to vector<8x16xf32>
    %117 = arith.addf %115, %116 : vector<8x16xf32>
    %118 = arith.negf %117 : vector<8x16xf32>
    %119 = math.exp %118 : vector<8x16xf32>
    %cst_43 = arith.constant 1.000000e+00 : f32
    %120 = vector.broadcast %cst_43 : f32 to vector<8x16xf32>
    %121 = arith.addf %120, %119 : vector<8x16xf32>
    %122 = arith.divf %120, %121 : vector<8x16xf32>
    %123 = arith.mulf %94, %122 : vector<8x16xf32>
    %c1 = arith.constant 1 : index
    %c0_44 = arith.constant 0 : index
    %c0_45 = arith.constant 0 : index
    %c0_46 = arith.constant 0 : index
    %124 = vector.load %arg6[%c1, %c0_44, %c0_45, %c0_46] : memref<4x2x16x16xf32, #tpu.memory_space<vmem>>, vector<1x2x16x16xf32>
    %125 = vector.shape_cast %124 : vector<1x2x16x16xf32> to vector<2x16x16xf32>
    %126 = vector.extract_strided_slice %125 {offsets = [0, 0, 0], sizes = [1, 16, 16], strides = [1, 1, 1]} : vector<2x16x16xf32> to vector<1x16x16xf32>
    %127 = vector.shape_cast %126 : vector<1x16x16xf32> to vector<16x16xf32>
    %128 = vector.extract_strided_slice %125 {offsets = [1, 0, 0], sizes = [1, 16, 16], strides = [1, 1, 1]} : vector<2x16x16xf32> to vector<1x16x16xf32>
    %129 = vector.shape_cast %128 : vector<1x16x16xf32> to vector<16x16xf32>
    %c1_47 = arith.constant 1 : index
    %c0_48 = arith.constant 0 : index
    %c0_49 = arith.constant 0 : index
    %130 = vector.load %arg7[%c1_47, %c0_48, %c0_49] : memref<4x4x16xf32, #tpu.memory_space<vmem>>, vector<1x4x16xf32>
    %131 = vector.shape_cast %130 : vector<1x4x16xf32> to vector<4x16xf32>
    %cst_50 = arith.constant dense<0.000000e+00> : vector<8x16xf32>
    %132 = tpu.matmul %123, %127, %cst_50 {dimension_numbers = #tpu.dot_dimension_numbers<[1], [0], [0], [1], [0, 0, 1, 1], [], []>} : vector<8x16xf32>, vector<16x16xf32>, vector<8x16xf32> -> vector<8x16xf32>
    %133 = vector.extract_strided_slice %131 {offsets = [0, 0], sizes = [1, 16], strides = [1, 1]} : vector<4x16xf32> to vector<1x16xf32>
    %134 = vector.extract_strided_slice %131 {offsets = [1, 0], sizes = [1, 16], strides = [1, 1]} : vector<4x16xf32> to vector<1x16xf32>
    %cst_51 = arith.constant dense<0.000000e+00> : vector<16xf32>
    %135 = vector.multi_reduction <add>, %132, %cst_51 [0] : vector<8x16xf32> to vector<16xf32>
    %136 = vector.shape_cast %135 : vector<16xf32> to vector<1x16xf32>
    %cst_52 = arith.constant 8.000000e+00 : f32
    %137 = vector.broadcast %cst_52 : f32 to vector<1x16xf32>
    %138 = arith.divf %136, %137 : vector<1x16xf32>
    %139 = vector.broadcast %138 : vector<1x16xf32> to vector<8x16xf32>
    %140 = arith.subf %132, %139 : vector<8x16xf32>
    %141 = arith.mulf %140, %140 : vector<8x16xf32>
    %cst_53 = arith.constant dense<0.000000e+00> : vector<16xf32>
    %142 = vector.multi_reduction <add>, %141, %cst_53 [0] : vector<8x16xf32> to vector<16xf32>
    %143 = vector.shape_cast %142 : vector<16xf32> to vector<1x16xf32>
    %cst_54 = arith.constant 8.000000e+00 : f32
    %144 = vector.broadcast %cst_54 : f32 to vector<1x16xf32>
    %145 = arith.divf %143, %144 : vector<1x16xf32>
    %cst_55 = arith.constant 9.99999974E-6 : f32
    %146 = vector.broadcast %cst_55 : f32 to vector<1x16xf32>
    %147 = arith.addf %145, %146 : vector<1x16xf32>
    %148 = math.rsqrt %147 : vector<1x16xf32>
    %149 = vector.broadcast %148 : vector<1x16xf32> to vector<8x16xf32>
    %150 = arith.mulf %140, %149 : vector<8x16xf32>
    %151 = vector.broadcast %133 : vector<1x16xf32> to vector<8x16xf32>
    %152 = arith.mulf %150, %151 : vector<8x16xf32>
    %153 = vector.broadcast %134 : vector<1x16xf32> to vector<8x16xf32>
    %154 = arith.addf %152, %153 : vector<8x16xf32>
    %cst_56 = arith.constant dense<0.000000e+00> : vector<8x16xf32>
    %155 = tpu.matmul %123, %129, %cst_56 {dimension_numbers = #tpu.dot_dimension_numbers<[1], [0], [0], [1], [0, 0, 1, 1], [], []>} : vector<8x16xf32>, vector<16x16xf32>, vector<8x16xf32> -> vector<8x16xf32>
    %156 = vector.extract_strided_slice %131 {offsets = [2, 0], sizes = [1, 16], strides = [1, 1]} : vector<4x16xf32> to vector<1x16xf32>
    %157 = vector.extract_strided_slice %131 {offsets = [3, 0], sizes = [1, 16], strides = [1, 1]} : vector<4x16xf32> to vector<1x16xf32>
    %cst_57 = arith.constant dense<0.000000e+00> : vector<16xf32>
    %158 = vector.multi_reduction <add>, %155, %cst_57 [0] : vector<8x16xf32> to vector<16xf32>
    %159 = vector.shape_cast %158 : vector<16xf32> to vector<1x16xf32>
    %cst_58 = arith.constant 8.000000e+00 : f32
    %160 = vector.broadcast %cst_58 : f32 to vector<1x16xf32>
    %161 = arith.divf %159, %160 : vector<1x16xf32>
    %162 = vector.broadcast %161 : vector<1x16xf32> to vector<8x16xf32>
    %163 = arith.subf %155, %162 : vector<8x16xf32>
    %164 = arith.mulf %163, %163 : vector<8x16xf32>
    %cst_59 = arith.constant dense<0.000000e+00> : vector<16xf32>
    %165 = vector.multi_reduction <add>, %164, %cst_59 [0] : vector<8x16xf32> to vector<16xf32>
    %166 = vector.shape_cast %165 : vector<16xf32> to vector<1x16xf32>
    %cst_60 = arith.constant 8.000000e+00 : f32
    %167 = vector.broadcast %cst_60 : f32 to vector<1x16xf32>
    %168 = arith.divf %166, %167 : vector<1x16xf32>
    %cst_61 = arith.constant 9.99999974E-6 : f32
    %169 = vector.broadcast %cst_61 : f32 to vector<1x16xf32>
    %170 = arith.addf %168, %169 : vector<1x16xf32>
    %171 = math.rsqrt %170 : vector<1x16xf32>
    %172 = vector.broadcast %171 : vector<1x16xf32> to vector<8x16xf32>
    %173 = arith.mulf %163, %172 : vector<8x16xf32>
    %174 = vector.broadcast %156 : vector<1x16xf32> to vector<8x16xf32>
    %175 = arith.mulf %173, %174 : vector<8x16xf32>
    %176 = vector.broadcast %157 : vector<1x16xf32> to vector<8x16xf32>
    %177 = arith.addf %175, %176 : vector<8x16xf32>
    %178 = arith.negf %177 : vector<8x16xf32>
    %179 = math.exp %178 : vector<8x16xf32>
    %cst_62 = arith.constant 1.000000e+00 : f32
    %180 = vector.broadcast %cst_62 : f32 to vector<8x16xf32>
    %181 = arith.addf %180, %179 : vector<8x16xf32>
    %182 = arith.divf %180, %181 : vector<8x16xf32>
    %183 = arith.mulf %154, %182 : vector<8x16xf32>
    %184 = arith.addf %123, %183 : vector<8x16xf32>
    %cst_63 = arith.constant 0.707106769 : f32
    %185 = vector.broadcast %cst_63 : f32 to vector<8x16xf32>
    %186 = arith.mulf %184, %185 : vector<8x16xf32>
    %c2 = arith.constant 2 : index
    %c0_64 = arith.constant 0 : index
    %c0_65 = arith.constant 0 : index
    %c0_66 = arith.constant 0 : index
    %187 = vector.load %arg6[%c2, %c0_64, %c0_65, %c0_66] : memref<4x2x16x16xf32, #tpu.memory_space<vmem>>, vector<1x2x16x16xf32>
    %188 = vector.shape_cast %187 : vector<1x2x16x16xf32> to vector<2x16x16xf32>
    %189 = vector.extract_strided_slice %188 {offsets = [0, 0, 0], sizes = [1, 16, 16], strides = [1, 1, 1]} : vector<2x16x16xf32> to vector<1x16x16xf32>
    %190 = vector.shape_cast %189 : vector<1x16x16xf32> to vector<16x16xf32>
    %191 = vector.extract_strided_slice %188 {offsets = [1, 0, 0], sizes = [1, 16, 16], strides = [1, 1, 1]} : vector<2x16x16xf32> to vector<1x16x16xf32>
    %192 = vector.shape_cast %191 : vector<1x16x16xf32> to vector<16x16xf32>
    %c2_67 = arith.constant 2 : index
    %c0_68 = arith.constant 0 : index
    %c0_69 = arith.constant 0 : index
    %193 = vector.load %arg7[%c2_67, %c0_68, %c0_69] : memref<4x4x16xf32, #tpu.memory_space<vmem>>, vector<1x4x16xf32>
    %194 = vector.shape_cast %193 : vector<1x4x16xf32> to vector<4x16xf32>
    %cst_70 = arith.constant dense<0.000000e+00> : vector<8x16xf32>
    %195 = tpu.matmul %186, %190, %cst_70 {dimension_numbers = #tpu.dot_dimension_numbers<[1], [0], [0], [1], [0, 0, 1, 1], [], []>} : vector<8x16xf32>, vector<16x16xf32>, vector<8x16xf32> -> vector<8x16xf32>
    %196 = vector.extract_strided_slice %194 {offsets = [0, 0], sizes = [1, 16], strides = [1, 1]} : vector<4x16xf32> to vector<1x16xf32>
    %197 = vector.extract_strided_slice %194 {offsets = [1, 0], sizes = [1, 16], strides = [1, 1]} : vector<4x16xf32> to vector<1x16xf32>
    %cst_71 = arith.constant dense<0.000000e+00> : vector<16xf32>
    %198 = vector.multi_reduction <add>, %195, %cst_71 [0] : vector<8x16xf32> to vector<16xf32>
    %199 = vector.shape_cast %198 : vector<16xf32> to vector<1x16xf32>
    %cst_72 = arith.constant 8.000000e+00 : f32
    %200 = vector.broadcast %cst_72 : f32 to vector<1x16xf32>
    %201 = arith.divf %199, %200 : vector<1x16xf32>
    %202 = vector.broadcast %201 : vector<1x16xf32> to vector<8x16xf32>
    %203 = arith.subf %195, %202 : vector<8x16xf32>
    %204 = arith.mulf %203, %203 : vector<8x16xf32>
    %cst_73 = arith.constant dense<0.000000e+00> : vector<16xf32>
    %205 = vector.multi_reduction <add>, %204, %cst_73 [0] : vector<8x16xf32> to vector<16xf32>
    %206 = vector.shape_cast %205 : vector<16xf32> to vector<1x16xf32>
    %cst_74 = arith.constant 8.000000e+00 : f32
    %207 = vector.broadcast %cst_74 : f32 to vector<1x16xf32>
    %208 = arith.divf %206, %207 : vector<1x16xf32>
    %cst_75 = arith.constant 9.99999974E-6 : f32
    %209 = vector.broadcast %cst_75 : f32 to vector<1x16xf32>
    %210 = arith.addf %208, %209 : vector<1x16xf32>
    %211 = math.rsqrt %210 : vector<1x16xf32>
    %212 = vector.broadcast %211 : vector<1x16xf32> to vector<8x16xf32>
    %213 = arith.mulf %203, %212 : vector<8x16xf32>
    %214 = vector.broadcast %196 : vector<1x16xf32> to vector<8x16xf32>
    %215 = arith.mulf %213, %214 : vector<8x16xf32>
    %216 = vector.broadcast %197 : vector<1x16xf32> to vector<8x16xf32>
    %217 = arith.addf %215, %216 : vector<8x16xf32>
    %cst_76 = arith.constant dense<0.000000e+00> : vector<8x16xf32>
    %218 = tpu.matmul %186, %192, %cst_76 {dimension_numbers = #tpu.dot_dimension_numbers<[1], [0], [0], [1], [0, 0, 1, 1], [], []>} : vector<8x16xf32>, vector<16x16xf32>, vector<8x16xf32> -> vector<8x16xf32>
    %219 = vector.extract_strided_slice %194 {offsets = [2, 0], sizes = [1, 16], strides = [1, 1]} : vector<4x16xf32> to vector<1x16xf32>
    %220 = vector.extract_strided_slice %194 {offsets = [3, 0], sizes = [1, 16], strides = [1, 1]} : vector<4x16xf32> to vector<1x16xf32>
    %cst_77 = arith.constant dense<0.000000e+00> : vector<16xf32>
    %221 = vector.multi_reduction <add>, %218, %cst_77 [0] : vector<8x16xf32> to vector<16xf32>
    %222 = vector.shape_cast %221 : vector<16xf32> to vector<1x16xf32>
    %cst_78 = arith.constant 8.000000e+00 : f32
    %223 = vector.broadcast %cst_78 : f32 to vector<1x16xf32>
    %224 = arith.divf %222, %223 : vector<1x16xf32>
    %225 = vector.broadcast %224 : vector<1x16xf32> to vector<8x16xf32>
    %226 = arith.subf %218, %225 : vector<8x16xf32>
    %227 = arith.mulf %226, %226 : vector<8x16xf32>
    %cst_79 = arith.constant dense<0.000000e+00> : vector<16xf32>
    %228 = vector.multi_reduction <add>, %227, %cst_79 [0] : vector<8x16xf32> to vector<16xf32>
    %229 = vector.shape_cast %228 : vector<16xf32> to vector<1x16xf32>
    %cst_80 = arith.constant 8.000000e+00 : f32
    %230 = vector.broadcast %cst_80 : f32 to vector<1x16xf32>
    %231 = arith.divf %229, %230 : vector<1x16xf32>
    %cst_81 = arith.constant 9.99999974E-6 : f32
    %232 = vector.broadcast %cst_81 : f32 to vector<1x16xf32>
    %233 = arith.addf %231, %232 : vector<1x16xf32>
    %234 = math.rsqrt %233 : vector<1x16xf32>
    %235 = vector.broadcast %234 : vector<1x16xf32> to vector<8x16xf32>
    %236 = arith.mulf %226, %235 : vector<8x16xf32>
    %237 = vector.broadcast %219 : vector<1x16xf32> to vector<8x16xf32>
    %238 = arith.mulf %236, %237 : vector<8x16xf32>
    %239 = vector.broadcast %220 : vector<1x16xf32> to vector<8x16xf32>
    %240 = arith.addf %238, %239 : vector<8x16xf32>
    %241 = arith.negf %240 : vector<8x16xf32>
    %242 = math.exp %241 : vector<8x16xf32>
    %cst_82 = arith.constant 1.000000e+00 : f32
    %243 = vector.broadcast %cst_82 : f32 to vector<8x16xf32>
    %244 = arith.addf %243, %242 : vector<8x16xf32>
    %245 = arith.divf %243, %244 : vector<8x16xf32>
    %246 = arith.mulf %217, %245 : vector<8x16xf32>
    %247 = arith.addf %186, %246 : vector<8x16xf32>
    %cst_83 = arith.constant 0.707106769 : f32
    %248 = vector.broadcast %cst_83 : f32 to vector<8x16xf32>
    %249 = arith.mulf %247, %248 : vector<8x16xf32>
    %c3 = arith.constant 3 : index
    %c0_84 = arith.constant 0 : index
    %c0_85 = arith.constant 0 : index
    %c0_86 = arith.constant 0 : index
    %250 = vector.load %arg6[%c3, %c0_84, %c0_85, %c0_86] : memref<4x2x16x16xf32, #tpu.memory_space<vmem>>, vector<1x2x16x16xf32>
    %251 = vector.shape_cast %250 : vector<1x2x16x16xf32> to vector<2x16x16xf32>
    %252 = vector.extract_strided_slice %251 {offsets = [0, 0, 0], sizes = [1, 16, 16], strides = [1, 1, 1]} : vector<2x16x16xf32> to vector<1x16x16xf32>
    %253 = vector.shape_cast %252 : vector<1x16x16xf32> to vector<16x16xf32>
    %254 = vector.extract_strided_slice %251 {offsets = [1, 0, 0], sizes = [1, 16, 16], strides = [1, 1, 1]} : vector<2x16x16xf32> to vector<1x16x16xf32>
    %255 = vector.shape_cast %254 : vector<1x16x16xf32> to vector<16x16xf32>
    %c3_87 = arith.constant 3 : index
    %c0_88 = arith.constant 0 : index
    %c0_89 = arith.constant 0 : index
    %256 = vector.load %arg7[%c3_87, %c0_88, %c0_89] : memref<4x4x16xf32, #tpu.memory_space<vmem>>, vector<1x4x16xf32>
    %257 = vector.shape_cast %256 : vector<1x4x16xf32> to vector<4x16xf32>
    %cst_90 = arith.constant dense<0.000000e+00> : vector<8x16xf32>
    %258 = tpu.matmul %249, %253, %cst_90 {dimension_numbers = #tpu.dot_dimension_numbers<[1], [0], [0], [1], [0, 0, 1, 1], [], []>} : vector<8x16xf32>, vector<16x16xf32>, vector<8x16xf32> -> vector<8x16xf32>
    %259 = vector.extract_strided_slice %257 {offsets = [0, 0], sizes = [1, 16], strides = [1, 1]} : vector<4x16xf32> to vector<1x16xf32>
    %260 = vector.extract_strided_slice %257 {offsets = [1, 0], sizes = [1, 16], strides = [1, 1]} : vector<4x16xf32> to vector<1x16xf32>
    %cst_91 = arith.constant dense<0.000000e+00> : vector<16xf32>
    %261 = vector.multi_reduction <add>, %258, %cst_91 [0] : vector<8x16xf32> to vector<16xf32>
    %262 = vector.shape_cast %261 : vector<16xf32> to vector<1x16xf32>
    %cst_92 = arith.constant 8.000000e+00 : f32
    %263 = vector.broadcast %cst_92 : f32 to vector<1x16xf32>
    %264 = arith.divf %262, %263 : vector<1x16xf32>
    %265 = vector.broadcast %264 : vector<1x16xf32> to vector<8x16xf32>
    %266 = arith.subf %258, %265 : vector<8x16xf32>
    %267 = arith.mulf %266, %266 : vector<8x16xf32>
    %cst_93 = arith.constant dense<0.000000e+00> : vector<16xf32>
    %268 = vector.multi_reduction <add>, %267, %cst_93 [0] : vector<8x16xf32> to vector<16xf32>
    %269 = vector.shape_cast %268 : vector<16xf32> to vector<1x16xf32>
    %cst_94 = arith.constant 8.000000e+00 : f32
    %270 = vector.broadcast %cst_94 : f32 to vector<1x16xf32>
    %271 = arith.divf %269, %270 : vector<1x16xf32>
    %cst_95 = arith.constant 9.99999974E-6 : f32
    %272 = vector.broadcast %cst_95 : f32 to vector<1x16xf32>
    %273 = arith.addf %271, %272 : vector<1x16xf32>
    %274 = math.rsqrt %273 : vector<1x16xf32>
    %275 = vector.broadcast %274 : vector<1x16xf32> to vector<8x16xf32>
    %276 = arith.mulf %266, %275 : vector<8x16xf32>
    %277 = vector.broadcast %259 : vector<1x16xf32> to vector<8x16xf32>
    %278 = arith.mulf %276, %277 : vector<8x16xf32>
    %279 = vector.broadcast %260 : vector<1x16xf32> to vector<8x16xf32>
    %280 = arith.addf %278, %279 : vector<8x16xf32>
    %cst_96 = arith.constant dense<0.000000e+00> : vector<8x16xf32>
    %281 = tpu.matmul %249, %255, %cst_96 {dimension_numbers = #tpu.dot_dimension_numbers<[1], [0], [0], [1], [0, 0, 1, 1], [], []>} : vector<8x16xf32>, vector<16x16xf32>, vector<8x16xf32> -> vector<8x16xf32>
    %282 = vector.extract_strided_slice %257 {offsets = [2, 0], sizes = [1, 16], strides = [1, 1]} : vector<4x16xf32> to vector<1x16xf32>
    %283 = vector.extract_strided_slice %257 {offsets = [3, 0], sizes = [1, 16], strides = [1, 1]} : vector<4x16xf32> to vector<1x16xf32>
    %cst_97 = arith.constant dense<0.000000e+00> : vector<16xf32>
    %284 = vector.multi_reduction <add>, %281, %cst_97 [0] : vector<8x16xf32> to vector<16xf32>
    %285 = vector.shape_cast %284 : vector<16xf32> to vector<1x16xf32>
    %cst_98 = arith.constant 8.000000e+00 : f32
    %286 = vector.broadcast %cst_98 : f32 to vector<1x16xf32>
    %287 = arith.divf %285, %286 : vector<1x16xf32>
    %288 = vector.broadcast %287 : vector<1x16xf32> to vector<8x16xf32>
    %289 = arith.subf %281, %288 : vector<8x16xf32>
    %290 = arith.mulf %289, %289 : vector<8x16xf32>
    %cst_99 = arith.constant dense<0.000000e+00> : vector<16xf32>
    %291 = vector.multi_reduction <add>, %290, %cst_99 [0] : vector<8x16xf32> to vector<16xf32>
    %292 = vector.shape_cast %291 : vector<16xf32> to vector<1x16xf32>
    %cst_100 = arith.constant 8.000000e+00 : f32
    %293 = vector.broadcast %cst_100 : f32 to vector<1x16xf32>
    %294 = arith.divf %292, %293 : vector<1x16xf32>
    %cst_101 = arith.constant 9.99999974E-6 : f32
    %295 = vector.broadcast %cst_101 : f32 to vector<1x16xf32>
    %296 = arith.addf %294, %295 : vector<1x16xf32>
    %297 = math.rsqrt %296 : vector<1x16xf32>
    %298 = vector.broadcast %297 : vector<1x16xf32> to vector<8x16xf32>
    %299 = arith.mulf %289, %298 : vector<8x16xf32>
    %300 = vector.broadcast %282 : vector<1x16xf32> to vector<8x16xf32>
    %301 = arith.mulf %299, %300 : vector<8x16xf32>
    %302 = vector.broadcast %283 : vector<1x16xf32> to vector<8x16xf32>
    %303 = arith.addf %301, %302 : vector<8x16xf32>
    %304 = arith.negf %303 : vector<8x16xf32>
    %305 = math.exp %304 : vector<8x16xf32>
    %cst_102 = arith.constant 1.000000e+00 : f32
    %306 = vector.broadcast %cst_102 : f32 to vector<8x16xf32>
    %307 = arith.addf %306, %305 : vector<8x16xf32>
    %308 = arith.divf %306, %307 : vector<8x16xf32>
    %309 = arith.mulf %280, %308 : vector<8x16xf32>
    %310 = arith.addf %249, %309 : vector<8x16xf32>
    %cst_103 = arith.constant 0.707106769 : f32
    %311 = vector.broadcast %cst_103 : f32 to vector<8x16xf32>
    %312 = arith.mulf %310, %311 : vector<8x16xf32>
    %313 = tpu.concatenate %312, %62 in 1 : vector<8x16xf32>, vector<8x16xf32> -> vector<8x32xf32>
    %c0_104 = arith.constant 0 : index
    %c0_105 = arith.constant 0 : index
    %314 = vector.load %arg8[%c0_104, %c0_105] : memref<8x32xf32, #tpu.memory_space<vmem>>, vector<8x32xf32>
    tpu.vector_store %arg8[%c0_104, %c0_105], %313 {strides = array<i32>} : memref<8x32xf32, #tpu.memory_space<vmem>>, vector<8x32xf32>,
    return
  }
  func.func @transform_0(%arg0: i32) -> (i32, i32) {
    %c0_i32 = arith.constant 0 : i32
    %c0_i32_0 = arith.constant 0 : i32
    return %arg0, %c0_i32 : i32, i32
  }
  func.func @transform_1(%arg0: i32) -> (i32, i32) {
    %c0_i32 = arith.constant 0 : i32
    %c0_i32_0 = arith.constant 0 : i32
    return %arg0, %c0_i32 : i32, i32
  }
  func.func @transform_2(%arg0: i32) -> (i32, i32) {
    %c0_i32 = arith.constant 0 : i32
    %c0_i32_0 = arith.constant 0 : i32
    return %arg0, %c0_i32 : i32, i32
  }
  func.func @transform_3(%arg0: i32) -> (i32, i32) {
    %c0_i32 = arith.constant 0 : i32
    %c0_i32_0 = arith.constant 0 : i32
    %c0_i32_1 = arith.constant 0 : i32
    return %c0_i32, %c0_i32_0 : i32, i32
  }
  func.func @transform_4(%arg0: i32) -> (i32, i32) {
    %c0_i32 = arith.constant 0 : i32
    %c0_i32_0 = arith.constant 0 : i32
    %c0_i32_1 = arith.constant 0 : i32
    return %c0_i32, %c0_i32_0 : i32, i32
  }
  func.func @transform_5(%arg0: i32) -> (i32, i32, i32, i32) {
    %c0_i32 = arith.constant 0 : i32
    %c0_i32_0 = arith.constant 0 : i32
    %c0_i32_1 = arith.constant 0 : i32
    %c0_i32_2 = arith.constant 0 : i32
    %c0_i32_3 = arith.constant 0 : i32
    return %c0_i32, %c0_i32_0, %c0_i32_1, %c0_i32_2 : i32, i32, i32, i32
  }
  func.func @transform_6(%arg0: i32) -> (i32, i32, i32) {
    %c0_i32 = arith.constant 0 : i32
    %c0_i32_0 = arith.constant 0 : i32
    %c0_i32_1 = arith.constant 0 : i32
    %c0_i32_2 = arith.constant 0 : i32
    return %c0_i32, %c0_i32_0, %c0_i32_1 : i32, i32, i32
  }
  func.func @transform_7(%arg0: i32) -> (i32, i32) {
    %c0_i32 = arith.constant 0 : i32
    %c0_i32_0 = arith.constant 0 : i32
    return %arg0, %c0_i32 : i32, i32
  }
}

</mosaic_0001>

<bundles_post_ra>
// kernel: tpu_custom_call.1
= control target key start
LH: loop header
LB: loop body
LE: loop exit
PB: predicated region body
PF: predicated region fallthrough
CT: control target
= control target key end

     0   :  { %s2896_s0 = inlined_call_operand.vmem [shape: f32[16,16], index: 0, kind: input, shape index: {}]   ;;  %s2897_s1 = inlined_call_operand.vmem [shape: f32[16,8], index: 1, kind: input, shape index: {}]   ;;  %s2898_s2 = inlined_call_operand.hbm [shape: f32[16,16], index: 2, kind: input, shape index: {}]   ;;  %s2899_s3 = inlined_call_operand.vmem [shape: f32[8,16], index: 3, kind: input, shape index: {}]   ;;  %s2900_s4 = inlined_call_operand.vmem [shape: f32[2,16], index: 4, kind: input, shape index: {}]   ;;  %s2901_s5 = inlined_call_operand.hbm [shape: f32[4,2,16,16], index: 5, kind: input, shape index: {}]   ;;  %s2902_s6 = inlined_call_operand.hbm [shape: f32[4,4,16], index: 6, kind: input, shape index: {}]   ;;  %s2903_s7 = inlined_call_operand.hbm [shape: f32[16,32], index: 7, kind: output, shape index: {}]  }
   0x1   :  { %2905 = sst [smem:[#allocation12_spill]] %s2901_s5 }
   0x2   :  { %2906 = sst [smem:[#allocation13_spill]] %s2902_s6 }
   0x3   :  { %12 = vsyncpa [#allocation3], 0 }
   0x4   :  { %14 = vsyncpa [#allocation3 + $0x1], 0 }
   0x5   :  { %15 = vsyncpa [#allocation6], 0 }
   0x6   :  { %16 = vsyncpa [#allocation4], 0 }
   0x7   :  { %18 = vsyncpa [#allocation4 + $0x1], 0  ;;  %s2243_s24 = smov 0   ;;  %s2245_s25 = smov 0  }
   0x8   :  { %s2247_s26 = smov 0   ;;  %s2249_s27 = smov 0  }
   0x9 LB: > { %s2907_s5 = sld [smem:[#allocation12_spill]]  ;;  %s2267_s8 = sadd.s32 4294967295, %s2191_s27   ;;  %s2191_s27 = sphi %s2249_s27, %s2943_s27   ;;  %s2187_s26 = sphi %s2247_s26, %s2942_s26   ;;  %s2183_s25 = sphi %s2245_s25, %s2941_s25   ;;  %s2179_s24 = sphi %s2243_s24, %s2940_s24  }
   0xa   : > { %p1847_p0 = scmp.ge.s32.totalorder %s2191_s27, 1  ;;  %p97_p1 = scmp.eq.s32.totalorder %s2267_s8, 0 }
   0xb   : > { %p217_p2 = scmp.lt.s32.totalorder %s2191_s27, 3  ;;  %s2193_s10 = smov [#allocation5]  }
   0xc   : > { %s236_s11 = sshll.u32 %s2193_s10, 4  ;;  %s2909_s6 = sld [smem:[#allocation13_spill]]  ;;  %s237_s11 = int_to_ptr.vmem [resolvable:$true] %s236_s11 }
   0xd   : > { %p2272_p3 = pnand %p1847_p0, %p217_p2  ;;  %s2194_s15 = smov [#allocation7]  }
   0xe   : > { %s250_s16 = sshll.u32 %s2194_s15, 4  ;;  %s2195_s17 = smov 128   ;;  %s251_s16 = int_to_ptr.vmem [resolvable:$true] %s250_s16 }
   0xf   : > { %s234_s30 = sshll.u32 %s2907_s5, 4  ;;  %p1906_p4 = pneg %p2272_p3  ;;  %s235_s30 = int_to_ptr.hbm [resolvable:$true] %s234_s30 }
  0x10   : > { %s2196_s18 = smov 8   ;;  %s2197_s19 = smov 64  }
  0x11   : > { %p1907_p6 = pnand %p1906_p4, %p97_p1  ;;  %s2198_s20 = smov 4  }
  0x12   : > { %s248_s14 = sshll.u32 %s2909_s6, 4  ;;  %s1846_s21 = sadd.s32 4294967294, %s2191_s27   ;;  %s249_s14 = int_to_ptr.hbm [resolvable:$true] %s248_s14 }
  0x13   : > { %1909 = dma.hbm_to_vmem [thread:$0]  (!%p1907_p6), %s235_s30, 2048, %s237_s11, [#allocation6], %s2195_s17, %s2195_s17, %s2196_s18  }
  0x14   : > { %1912 = dma.hbm_to_vmem [thread:$0]  (!%p1907_p6), %s249_s14, 256, %s251_s16, [#allocation6], %s2197_s19, %s2197_s19, %s2198_s20  }
  0x15   : > { %s2286_s22 = sadd.s32 1, %s2191_s27   ;;  %s83_s28 = sadd.s32 1, %s2187_s26 }
  0x16   : > { %s80_s23 = ssub.s32 %s2191_s27, %s2286_s22  ;;  %p90_p8 = scmp.ne.s32.totalorder %s2187_s26, %s2183_s25 }
  0x17   : > { %p81_p7 = scmp.eq.s32.totalorder %s80_s23, 0  ;;  %p91_p9 = scmp.eq.s32.totalorder %s2191_s27, 0 }
  0x18   : > { %p96_p10 = scmp.ne.s32.totalorder %s2183_s25, %s2179_s24  ;;  %p204_p13 = scmp.eq.s32.totalorder %s2267_s8, 1 }
  0x19   : > { %s2297_s29 = scalar_select %p81_p7, %s2187_s26, %s83_s28  }
  0x1a   : > { %p2299_p11 = por %p91_p9, %p90_p8  ;;  %p2305_p12 = por %p97_p1, %p96_p10 }
  0x1b   : > { %p210_p0 = scmp.eq.s32.totalorder %s1846_s21, 1  ;;  %p1923_p2 = scmp.lt.s32.totalorder %s2191_s27, 2 }
  0x1c   : > { %s278_s11 = sand.u32 1, %s2187_s26   ;;  %p2312_p4 = por %p204_p13, %p90_p8 }
  0x1d   : > { %p2316_p6 = por %p210_p0, %p96_p10  ;;  %s1851_s14 = sshll.u32 %s278_s11, 3 }
  0x1e   : > { %s1852_s15 = sshll.u32 %s2191_s27, 3  ;;  %s282_s19 = scalar_lea.vmem [#allocation2], %s1851_s14 }
  0x1f   : > { %s286_s18 = scalar_lea.hbm %s2898_s2, %s1852_s15  ;;  %s290_s20 = sshll.u32 %s282_s19, 4  ;;  %s291_s20 = int_to_ptr.vmem [resolvable:$true] %s290_s20 }
  0x20   : > { %s288_s23 = sshll.u32 %s286_s18, 4  ;;  %p2326_p7 = pnand %p1923_p2, %p2299_p11  ;;  %s289_s23 = int_to_ptr.hbm [resolvable:$true] %s288_s23 }
  0x21   : > { %s279_s28 = scalar_lea.sflag [#allocation3], %s278_s11  ;;  %s2091_s5 = sshra.s32 %s289_s23, 4  ;;  %s2092_s5 = int_to_ptr.hbm [resolvable:$true] %s2091_s5 }
  0x22   : > { %s2093_s6 = scalar_lea.hbm %s2092_s5, 8  ;;  %p2095_p9 = pneg %p2326_p7 }
  0x23   : > { %p2094_p8 = scmp.ne.s32.totalorder %s2092_s5, %s2093_s6  ;;  %s2098_s16 = scalar_lea.hbm %s2898_s2, 16 }
  0x24   : > { %p2099_p11 = scmp.lt.s32.totalorder %s2092_s5, %s2898_s2  ;;  %p2100_p0 = scmp.lt.s32.totalorder %s2098_s16, %s2093_s6 }
  0x25   : > { %p2096_p10 = pnand %p2095_p9, %p2094_p8 }
  0x26   : > { %p2101_p2 = por %p2100_p0, %p2099_p11 }
  0x27   : > { %p2097_p13 = pneg %p2096_p10 }
  0x29   : > { %p2102_p5 = pnand %p2101_p2, %p2097_p13 }
  0x2b   : > { %2105 = shalt.err (!%p2102_p5)
}
  0x2c   : > { %1916 = dma.hbm_to_vmem [thread:$0]  (!%p2326_p7), %s289_s23, 128, %s291_s20, %s279_s28  }
  0x2d   : > { %299 = sbr.rel (%p2272_p3) target bundleno = 1931 (0x78b), region = 48  ;;  %s2343_s11 = sand.u32 (!%p2272_p3), 1, %s2183_s25  }
  0x2e   : > { %s1854_s18 = sshll.u32 (!%p2272_p3), %s2343_s11, 3  ;;  %s302_s19 = scalar_lea.sflag (!%p2272_p3), [#allocation3], %s2343_s11 }
  0x2f   : > { %s2349_s5 = scalar_lea.vmem (!%p2272_p3), [#allocation2], %s1854_s18 }
  0x32   : > { %2166 = dma.done.wait (%p2305_p12), %s302_s19, 128  }
  0x33   : > { %2168 = vsyncadd (%p2305_p12), %s302_s19, 4294967168 }
  0x34   : > { %2170 = dma.done.wait (%p97_p1), [#allocation6], 2304  }
  0x35   : > { %2172 = vsyncadd (%p97_p1), [#allocation6], 4294964992  ;;  %p355_p3 = scmp.lt.s32.totalorder %s2267_s8, 1  ;;  %vm368_vm0 = vcmask 64512   ;;  %v367_v0 = vld [vmem:[%s2899_s3] sm:$0xff]  ;;  %v2199_v2 = vmov 8.0   ;;  %v440_v27 = vlaneseq }
  0x36   : > { %387 = vmatpush.msra.mxu0 %v367_v0  ;;  %1993 = vrcp.f32 %v2199_v2  ;;  %vm2904_vm1 = vcmask 130048   ;;  %v366_v37 = vld [vmem:[%s2900_s4] sm:$0x3]  ;;  %s2202_s19 = smov 16   ;;  %s354_s23 = scalar_lea.vmem [#allocation8], %s1854_s18 }
  0x37   : > { %s2361_s6 = scalar_select %p355_p3, %s2267_s8, 1  ;;  %v2379_v29 = vshrl.u32 %v440_v27, 7  ;;  %v430_v39 = vperm.slane %v366_v37, 0  ;;  %v432_v42 = vperm.slane %v366_v37, 1  ;;  %v365_v44 = vld [vmem:[%s2349_s5] sm:$0xff] }
  0x38   : > { %s1891_s5 = sshll.u32 %s2267_s8, 3  ;;  %s1718_s8 = scalar_lea.sflag [#allocation4], %s2343_s11 }
  0x39   : > { %s1858_s9 = sshll.u32 %s2361_s6, 3  ;;  %1969 = vset.pattern.permute.xlu0 %v2379_v29  ;;  %v2383_v31 = vadd.s32 8, %v2379_v29  ;;  %s1728_s20 = scalar_lea.hbm %s2903_s7, %s1891_s5 }
  0x3a   : > { %s362_s10 = scalar_lea.vmem %s2897_s1, %s1858_s9  ;;  %s358_s30 = scalar_lea.vmem %s2896_s0, %s1858_s9 }
  0x3b   : > { %v364_v1 = vld [vmem:[%s362_s10] sm:$0xff]  ;;  %1972 = vset.pattern.permute.xlu2 %v2383_v31  ;;  %1970 = vset.pattern.permute.xlu1 %v2383_v31  ;;  %s1730_s10 = sshll.u32 %s354_s23, 4  ;;  %s1732_s21 = sshll.u32 %s1728_s20, 4  ;;  %s1731_s10 = int_to_ptr.vmem [resolvable:$true] %s1730_s10  ;;  %s1733_s21 = int_to_ptr.hbm [resolvable:$true] %s1732_s21 }
  0x3c   : > { %1860 = vmatmul.msk.f32.vlgmr.msra.gmra.mxu0 %vm368_vm0, %v364_v1  ;;  %v1994_v3 = vpop.eup %1993  ;;  %s2135_s28 = sshra.s32 %s1733_s21, 4  ;;  %s2141_s16 = scalar_lea.hbm %s2903_s7, 16  ;;  %s2136_s28 = int_to_ptr.hbm [resolvable:$true] %s2135_s28 }
  0x3d   : > { %v401_v4 = vmul.f32 8.0, %v1994_v3  ;;  %vm405_vm2 = vweird.f32 %v1994_v3  ;;  %s2137_s14 = scalar_lea.hbm %s2136_s28, 8  ;;  %p2142_p7 = scmp.lt.s32.totalorder %s2136_s28, %s2903_s7 }
  0x3e   : > { %p2138_p1 = scmp.ne.s32.totalorder %s2136_s28, %s2137_s14  ;;  %p2143_p8 = scmp.lt.s32.totalorder %s2141_s16, %s2137_s14 }
  0x3f   : > { %v402_v5 = vsub.f32 1.0, %v401_v4 }
  0x40   : > { %p2139_p5 = pnand %p2138_p1, %p2312_p4  ;;  %p2144_p9 = por %p2143_p8, %p2142_p7 }
  0x41   : > { %v403_v9 = vmul.f32 %v1994_v3, %v402_v5 }
  0x42   : > { %p2140_p12 = pneg %p2139_p5 }
  0x43   : > { %v404_v12 = vadd.f32 %v1994_v3, %v403_v9 }
  0x44   : > { %p2145_p10 = pnand %p2144_p9, %p2140_p12 }
  0x45   : > { %v2373_v15 = vsel %vm405_vm2, %v1994_v3, %v404_v12  ;;  %v2200_v3 = vmov 0.0  }
  0xb9   : > { %v389_v6 = vpop.f32.mrf.mxu0 }
  0xba   : > { %v393_v7 = vsel %vm2904_vm1, %v389_v6, 0.0 }
  0xbb   : > { %v394_v8 = vrot.slane %v393_v7, 4 }
  0xbd   : > { %v395_v10 = vadd.f32 %v394_v8, %v393_v7 }
  0xbf   : > { %v396_v11 = vrot.slane %v395_v10, 2 }
  0xc1   : > { %v397_v13 = vadd.f32 %v396_v11, %v395_v10 }
  0xc3   : > { %v398_v14 = vrot.slane %v397_v13, 1 }
  0xc5   : > { %v399_v16 = vadd.f32 %v398_v14, %v397_v13 }
  0xc7   : > { %v407_v17 = vmul.f32 %v2373_v15, %v399_v16 }
  0xc9   : > { %v408_v18 = vsub.f32 %v389_v6, %v407_v17 }
  0xcb   : > { %v409_v19 = vmul.f32 %v408_v18, %v408_v18 }
  0xcd   : > { %v410_v20 = vsel %vm2904_vm1, %v409_v19, 0.0 }
  0xce   : > { %v411_v21 = vrot.slane %v410_v20, 4 }
  0xd0   : > { %v412_v22 = vadd.f32 %v411_v21, %v410_v20 }
  0xd2   : > { %v413_v23 = vrot.slane %v412_v22, 2 }
  0xd4   : > { %v414_v24 = vadd.f32 %v413_v23, %v412_v22 }
  0xd6   : > { %v415_v25 = vrot.slane %v414_v24, 1 }
  0xd8   : > { %v416_v26 = vadd.f32 %v415_v25, %v414_v24 }
  0xda   : > { %v417_v28 = vmul.f32 %v416_v26, %v2373_v15 }
  0xdc   : > { %v418_v30 = vadd.f32 1e-05, %v417_v28 }
  0xde   : > { %1995 = vrsqrt.f32 %v418_v30  ;;  %vm425_vm4 = vweird.f32 %v418_v30 }
  0xe4   : > { %v1996_v32 = vpop.eup %1995 }
  0xe5   : > { %v420_v33 = vmul.f32 %v1996_v32, %v418_v30  ;;  %vm426_vm3 = vweird.f32 %v1996_v32 }
  0xe6   : > { %vm427_vm5 = vmor %vm425_vm4, %vm426_vm3 }
  0xe7   : > { %v421_v34 = vmul.f32 %v1996_v32, %v420_v33 }
  0xe9   : > { %v422_v35 = vmul.f32 0.5, %v421_v34 }
  0xeb   : > { %v423_v36 = vsub.f32 1.5, %v422_v35 }
  0xed   : > { %v424_v38 = vmul.f32 %v1996_v32, %v423_v36 }
  0xef   : > { %v428_v40 = vsel %vm427_vm5, %v1996_v32, %v424_v38 }
  0xf0   : > { %v429_v41 = vmul.f32 %v428_v40, %v408_v18 }
  0xf2   : > { %v431_v43 = vmul.f32 %v430_v39, %v429_v41 }
  0xf4   : > { %v433_v45 = vadd.f32 %v432_v42, %v431_v43 }
  0xf6   : > { %v434_v46 = vmul.f32 %v433_v45, %v365_v44 }
  0xf8   : > { %v435_v47 = vsel %vm2904_vm1, %v434_v46, -inf }
  0xf9   : > { %436 = vmax.xlane.f32.xlu0 %v435_v47 }
 0x16c   : > { %v437_v48 = vpop.xlane.xlu0 %436 }
 0x16d   : > { %v2392_v49 = vsub.f32 %v434_v46, %v437_v48 }
 0x16f   : > { %v452_v50 = vperm.slane %v2392_v49, 1  ;;  %v2396_v51 = vperm.slane %v2392_v49, 0  ;;  %v465_v52 = vperm.slane %v2392_v49, 2  ;;  %v2405_v53 = vperm.slane %v2392_v49, 6 }
 0x170   : > { %v478_v54 = vperm.slane %v2392_v49, 3  ;;  %v491_v55 = vperm.slane %v2392_v49, 4  ;;  %v504_v56 = vperm.slane %v2392_v49, 5  ;;  %v530_v57 = vperm.slane %v2392_v49, 7 }
 0x171   : > { %463 = vperm.xlu2 %1972, %v452_v50   ;;  %450 = vperm.xlu1 %1970, %v2396_v51   ;;  %v544_v62 = vrot.slane %v2392_v49, 1  ;;  %v547_v2 = vrot.slane %v2392_v49, 4  ;;  %v550_v11 = vrot.slane %v2392_v49, 7  ;;  %v545_v26 = vrot.slane %v2392_v49, 2 }
 0x172   : > { %444 = vperm.xlu0 %1969, %v2396_v51   ;;  %v546_v34 = vrot.slane %v2392_v49, 3  ;;  %v548_v47 = vrot.slane %v2392_v49, 5  ;;  %v549_v48 = vrot.slane %v2392_v49, 6 }
 0x173   : > { %v552_v0 = vperm.slane %v544_v62, 0  ;;  %v2440_v6 = vperm.slane %v547_v2, 0  ;;  %v2450_v13 = vperm.slane %v550_v11, 0  ;;  %v2469_v30 = vperm.slane %v545_v26, 0 }
 0x174   : > { %v2476_v37 = vperm.slane %v546_v34, 0 }
 0x179   : > { %1973 = vset.pattern.permute.xlu2 %v2379_v29  ;;  %1971 = vset.pattern.permute.xlu1 %v2379_v29 }
 0x17a   : > { %1975 = vset.pattern.permute.xlu0 %v2383_v31 }
 0x181   : > { %470 = vperm.xlu2 %1973, %v465_v52   ;;  %457 = vperm.xlu1 %1971, %v452_v50  }
 0x182   : > { %528 = vperm.xlu0 %1975, %v2405_v53  }
 0x189   : > { %483 = vperm.xlu2 %1973, %v478_v54   ;;  %1974 = vset.pattern.permute.xlu1 %v2383_v31 }
 0x18a   : > { %1978 = vset.pattern.permute.xlu0 %v2379_v29 }
 0x191   : > { %496 = vperm.xlu2 %1973, %v491_v55   ;;  %476 = vperm.xlu1 %1974, %v465_v52  }
 0x192   : > { %731 = vperm.xlu0 %1978, %v2396_v51  }
 0x199   : > { %509 = vperm.xlu2 %1973, %v504_v56   ;;  %489 = vperm.xlu1 %1974, %v478_v54  }
 0x19a   : > { %757 = vperm.xlu0 %1978, %v465_v52  }
 0x1a1   : > { %522 = vperm.xlu2 %1973, %v2405_v53   ;;  %502 = vperm.xlu1 %1974, %v491_v55  }
 0x1a2   : > { %1981 = vset.pattern.permute.xlu0 %v2383_v31 }
 0x1a9   : > { %1977 = vset.pattern.permute.xlu2 %v2383_v31  ;;  %515 = vperm.xlu1 %1974, %v504_v56  }
 0x1aa   : > { %763 = vperm.xlu0 %1981, %v465_v52  }
 0x1b1   : > { %541 = vperm.xlu2 %1977, %v530_v57   ;;  %1976 = vset.pattern.permute.xlu1 %v2379_v29 }
 0x1b2   : > { %1984 = vset.pattern.permute.xlu0 %v2379_v29 }
 0x1b9   : > { %1980 = vset.pattern.permute.xlu2 %v2379_v29  ;;  %535 = vperm.xlu1 %1976, %v530_v57  }
 0x1ba   : > { %783 = vperm.xlu0 %1984, %v491_v55  }
 0x1c1   : > { %744 = vperm.xlu2 %1980, %v452_v50   ;;  %1979 = vset.pattern.permute.xlu1 %v2383_v31 }
 0x1c2   : > { %1987 = vset.pattern.permute.xlu0 %v2383_v31 }
 0x1c9   : > { %1983 = vset.pattern.permute.xlu2 %v2383_v31  ;;  %737 = vperm.xlu1 %1979, %v2396_v51  }
 0x1ca   : > { %802 = vperm.xlu0 %1987, %v504_v56  }
 0x1cb   : > { %v464_v58 = vpop.permute.xlu2 %463 }
 0x1cc   : > { %vm570_vm11 = vcmp.ge.f32.partialorder %v552_v0, %v464_v58 }
 0x1d1   : > { %776 = vperm.xlu2 %1983, %v478_v54   ;;  %750 = vperm.xlu1 %1979, %v452_v50  }
 0x1d2   : > { %828 = vperm.xlu0 %1987, %v530_v57  }
 0x1d9   : > { %1986 = vset.pattern.permute.xlu2 %v2379_v29  ;;  %1982 = vset.pattern.permute.xlu1 %v2379_v29 }
 0x1db   : > { %v2427_v59 = vpop.permute.xlu2 %470 }
 0x1dc   : > { %vm571_vm15 = vcmp.ge.f32.partialorder %v2469_v30, %v2427_v59 }
 0x1dd   : > { %v1865_v52 = vsel %vm571_vm15, 1.0, %v2200_v3 }
 0x1e1   : > { %796 = vperm.xlu2 %1986, %v504_v56   ;;  %770 = vperm.xlu1 %1982, %v478_v54   ;;  %v556_v54 = vperm.slane %v548_v47, 0  ;;  %v557_v56 = vperm.slane %v549_v48, 0 }
 0x1e3   : > { %v2429_v60 = vpop.permute.xlu2 %483  ;;  %v451_v61 = vpop.permute.xlu1 %450 }
 0x1e4   : > { %v445_v12 = vpop.permute.xlu0 %444  ;;  %vm568_vm10 = vcmp.ge.f32.partialorder %v2396_v51, %v451_v61  ;;  %vm573_vm13 = vcmp.ge.f32.partialorder %v2476_v37, %v2429_v60 }
 0x1e5   : > { %vm567_vm8 = vcmp.ge.f32.partialorder %v2396_v51, %v445_v12  ;;  %v1862_v22 = vsel %vm568_vm10, 1.0, %v2200_v3  ;;  %v1867_v42 = vsel %vm573_vm13, 1.0, %v2200_v3 }
 0x1e6   : > { %v1861_v19 = vsel %vm567_vm8, 1.0, %v2200_v3  ;;  %v618_v23 = vsel %vm2904_vm1, %v1862_v22, 0.0  ;;  %v664_v25 = vmul.f32 %v1862_v22, %v2396_v51  ;;  %v633_v43 = vsel %vm2904_vm1, %v1867_v42, 0.0 }
 0x1e7   : > { %v663_v20 = vmul.f32 %v1861_v19, %v2396_v51  ;;  %v615_v44 = vsel %vm2904_vm1, %v1861_v19, 0.0 }
 0x1e8   : > { %v682_v28 = vsel %vm2904_vm1, %v664_v25, 0.0 }
 0x1e9   : > { %1989 = vset.pattern.permute.xlu2 %v2383_v31  ;;  %1985 = vset.pattern.permute.xlu1 %v2383_v31  ;;  %v679_v21 = vsel %vm2904_vm1, %v663_v20, 0.0  ;;  %v669_v20 = vmul.f32 %v1867_v42, %v2476_v37 }
 0x1eb   : > { %v497_v63 = vpop.permute.xlu2 %496  ;;  %v697_v22 = vsel %vm2904_vm1, %v669_v20, 0.0 }
 0x1ec   : > { %vm575_vm7 = vcmp.ge.f32.partialorder %v2440_v6, %v497_v63 }
 0x1ed   : > { %v1869_v8 = vsel %vm575_vm7, 1.0, %v2200_v3 }
 0x1ee   : > { %v639_v10 = vsel %vm2904_vm1, %v1869_v8, 0.0  ;;  %v671_v45 = vmul.f32 %v1869_v8, %v2440_v6 }
 0x1f0   : > { %v703_v50 = vsel %vm2904_vm1, %v671_v45, 0.0 }
 0x1f1   : > { %815 = vperm.xlu2 %1989, %v2405_v53   ;;  %789 = vperm.xlu1 %1985, %v491_v55  }
 0x1f3   : > { %v458_v1 = vpop.permute.xlu1 %457  ;;  %v2437_v5 = vpop.permute.xlu2 %509 }
 0x1f4   : > { %vm569_vm6 = vcmp.ge.f32.partialorder %v552_v0, %v458_v1  ;;  %v529_v46 = vpop.permute.xlu0 %528  ;;  %vm577_vm4 = vcmp.ge.f32.partialorder %v556_v54, %v2437_v5 }
 0x1f5   : > { %v1863_v4 = vsel %vm569_vm6, 1.0, %v2200_v3  ;;  %vm580_vm5 = vcmp.ge.f32.partialorder %v557_v56, %v529_v46 }
 0x1f6   : > { %v621_v7 = vsel %vm2904_vm1, %v1863_v4, 0.0  ;;  %v665_v32 = vmul.f32 %v1863_v4, %v552_v0  ;;  %v1874_v11 = vsel %vm580_vm5, 1.0, %v2200_v3 }
 0x1f7   : > { %v676_v34 = vmul.f32 %v1874_v11, %v557_v56 }
 0x1f8   : > { %v685_v35 = vsel %vm2904_vm1, %v665_v32, 0.0 }
 0x1f9   : > { %1988 = vset.pattern.permute.xlu1 %v2379_v29  ;;  %v1864_v29 = vsel %vm570_vm11, 1.0, %v2200_v3 }
 0x1fa   : > { %v624_v31 = vsel %vm2904_vm1, %v1864_v29, 0.0  ;;  %v666_v39 = vmul.f32 %v1864_v29, %v552_v0 }
 0x1fb   : > { %v2446_v9 = vpop.permute.xlu2 %522 }
 0x1fc   : > { %622 = vadd.xlane.f32.xlu0 %v621_v7  ;;  %v688_v41 = vsel %vm2904_vm1, %v666_v39, 0.0  ;;  %vm579_vm2 = vcmp.ge.f32.partialorder %v557_v56, %v2446_v9  ;;  %v1871_v7 = vsel %vm577_vm4, 1.0, %v2200_v3 }
 0x1fd   : > { %v1873_v62 = vsel %vm579_vm2, 1.0, %v2200_v3  ;;  %v645_v9 = vsel %vm2904_vm1, %v1871_v7, 0.0  ;;  %v673_v29 = vmul.f32 %v1871_v7, %v556_v54 }
 0x1fe   : > { %v675_v2 = vmul.f32 %v1873_v62, %v557_v56  ;;  %v651_v8 = vsel %vm2904_vm1, %v1873_v62, 0.0 }
 0x201   : > { %809 = vperm.xlu1 %1988, %v2405_v53  }
 0x203   : > { %v477_v24 = vpop.permute.xlu1 %476 }
 0x204   : > { %640 = vadd.xlane.f32.xlu0 %v639_v10  ;;  %vm572_vm12 = vcmp.ge.f32.partialorder %v2469_v30, %v477_v24  ;;  %v2498_v59 = vpop.permute.xlu0 %731 }
 0x205   : > { %v1866_v36 = vsel %vm572_vm12, 1.0, %v2200_v3 }
 0x206   : > { %v630_v38 = vsel %vm2904_vm1, %v1866_v36, 0.0  ;;  %v668_v5 = vmul.f32 %v1866_v36, %v2469_v30 }
 0x209   : > { %822 = vperm.xlu1 %1988, %v530_v57   ;;  %v627_v57 = vsel %vm2904_vm1, %v1865_v52, 0.0 }
 0x20b   : > { %v542_v14 = vpop.permute.xlu2 %541  ;;  %v490_v33 = vpop.permute.xlu1 %489 }
 0x20c   : > { %vm582_vm9 = vcmp.ge.f32.partialorder %v2450_v13, %v542_v14  ;;  %vm574_vm3 = vcmp.ge.f32.partialorder %v2476_v37, %v490_v33  ;;  %v2508_v4 = vpop.permute.xlu0 %757  ;;  %v654_v14 = vsel %vm2904_vm1, %v1874_v11, 0.0  ;;  %v709_v33 = vsel %vm2904_vm1, %v673_v29, 0.0 }
 0x20d   : > { %v1876_v16 = vsel %vm582_vm9, 1.0, %v2200_v3  ;;  %v1868_v63 = vsel %vm574_vm3, 1.0, %v2200_v3 }
 0x20e   : > { %v660_v17 = vsel %vm2904_vm1, %v1876_v16, 0.0  ;;  %v2457_v18 = vmul.f32 %v1876_v16, %v2450_v13  ;;  %v636_v1 = vsel %vm2904_vm1, %v1868_v63, 0.0  ;;  %v694_v16 = vsel %vm2904_vm1, %v668_v5, 0.0 }
 0x20f   : > { %661 = vadd.xlane.f32.xlu0 %v660_v17  ;;  %v670_v25 = vmul.f32 %v1868_v63, %v2476_v37  ;;  %v718_v37 = vsel %vm2904_vm1, %v676_v34, 0.0 }
 0x210   : > { %v724_v42 = vsel %vm2904_vm1, %v2457_v18, 0.0 }
 0x213   : > { %v503_v40 = vpop.permute.xlu1 %502 }
 0x214   : > { %vm576_vm14 = vcmp.ge.f32.partialorder %v2440_v6, %v503_v40 }
 0x215   : > { %v1870_v51 = vsel %vm576_vm14, 1.0, %v2200_v3 }
 0x216   : > { %v642_v55 = vsel %vm2904_vm1, %v1870_v51, 0.0  ;;  %v672_v58 = vmul.f32 %v1870_v51, %v2440_v6  ;;  %v715_v6 = vsel %vm2904_vm1, %v675_v2, 0.0 }
 0x217   : > { %680 = vadd.xlane.f32.xlu0 %v679_v21 }
 0x218   : > { %v706_v60 = vsel %vm2904_vm1, %v672_v58, 0.0 }
 0x21a   : > { %619 = vadd.xlane.f32.xlu2 %v618_v23  ;;  %v667_v23 = vmul.f32 %v1865_v52, %v2469_v30 }
 0x21b   : > { %v516_v53 = vpop.permute.xlu1 %515  ;;  %v2537_v30 = vpop.permute.xlu2 %744 }
 0x21c   : > { %vm578_vm0 = vcmp.ge.f32.partialorder %v556_v54, %v516_v53  ;;  %v2514_v10 = vpop.permute.xlu0 %763  ;;  %v691_v26 = vsel %vm2904_vm1, %v667_v23, 0.0 }
 0x21d   : > { %v1872_v61 = vsel %vm578_vm0, 1.0, %v2200_v3 }
 0x21e   : > { %v648_v0 = vsel %vm2904_vm1, %v1872_v61, 0.0 }
 0x21f   : > { %683 = vadd.xlane.f32.xlu0 %v682_v28  ;;  %v700_v28 = vsel %vm2904_vm1, %v670_v25, 0.0 }
 0x222   : > { %625 = vadd.xlane.f32.xlu2 %v624_v31 }
 0x227   : > { %686 = vadd.xlane.f32.xlu0 %v685_v35 }
 0x22a   : > { %631 = vadd.xlane.f32.xlu2 %v630_v38 }
 0x22b   : > { %v536_v12 = vpop.permute.xlu1 %535  ;;  %v2544_v40 = vpop.permute.xlu2 %776 }
 0x22c   : > { %vm581_vm6 = vcmp.ge.f32.partialorder %v2450_v13, %v536_v12  ;;  %v2521_v17 = vpop.permute.xlu0 %783 }
 0x22d   : > { %v1875_v19 = vsel %vm581_vm6, 1.0, %v2200_v3  ;;  %v674_v3 = vmul.f32 %v1872_v61, %v556_v54 }
 0x22e   : > { %v657_v21 = vsel %vm2904_vm1, %v1875_v19, 0.0  ;;  %v677_v35 = vmul.f32 %v1875_v19, %v2450_v13 }
 0x22f   : > { %689 = vadd.xlane.f32.xlu0 %v688_v41  ;;  %v712_v32 = vsel %vm2904_vm1, %v674_v3, 0.0  ;;  %v2201_v41 = vmov 0  }
 0x230   : > { %v721_v39 = vsel %vm2904_vm1, %v677_v35, 0.0  ;;  %1991 = vset.pattern.permute.xlu0 %v2201_v41  ;;  %1992 = vset.pattern.permute.xlu2 %v2201_v41 }
 0x231   : > { %1990 = vset.pattern.permute.xlu1 %v2201_v41 }
 0x232   : > { %634 = vadd.xlane.f32.xlu2 %v633_v43 }
 0x233   : > { %616 = vadd.xlane.f32.xlu1 %v615_v44 }
 0x237   : > { %704 = vadd.xlane.f32.xlu0 %v703_v50 }
 0x23a   : > { %643 = vadd.xlane.f32.xlu2 %v642_v55 }
 0x23b   : > { %628 = vadd.xlane.f32.xlu1 %v627_v57  ;;  %v2541_v38 = vpop.permute.xlu1 %737  ;;  %v2550_v44 = vpop.permute.xlu2 %796 }
 0x23c   : > { %v2528_v24 = vpop.permute.xlu0 %802 }
 0x23f   : > { %707 = vadd.xlane.f32.xlu0 %v706_v60 }
 0x242   : > { %649 = vadd.xlane.f32.xlu2 %v648_v0 }
 0x243   : > { %637 = vadd.xlane.f32.xlu1 %v636_v1  ;;  %v2548_v13 = vpop.permute.xlu1 %750 }
 0x244   : > { %v2533_v31 = vpop.permute.xlu0 %828 }
 0x247   : > { %716 = vadd.xlane.f32.xlu0 %v715_v6 }
 0x24a   : > { %652 = vadd.xlane.f32.xlu2 %v651_v8 }
 0x24b   : > { %646 = vadd.xlane.f32.xlu1 %v645_v9  ;;  %v2556_v47 = vpop.permute.xlu2 %815 }
 0x252   : > { %655 = vadd.xlane.f32.xlu2 %v654_v14 }
 0x253   : > { %695 = vadd.xlane.f32.xlu1 %v694_v16  ;;  %v2554_v46 = vpop.permute.xlu1 %770 }
 0x25a   : > { %658 = vadd.xlane.f32.xlu2 %v657_v21 }
 0x25b   : > { %698 = vadd.xlane.f32.xlu1 %v697_v22 }
 0x262   : > { %692 = vadd.xlane.f32.xlu2 %v691_v26 }
 0x263   : > { %701 = vadd.xlane.f32.xlu1 %v700_v28  ;;  %v2560_v50 = vpop.permute.xlu1 %789 }
 0x26a   : > { %713 = vadd.xlane.f32.xlu2 %v712_v32 }
 0x26b   : > { %710 = vadd.xlane.f32.xlu1 %v709_v33 }
 0x26f   : > { %v623_v36 = vpop.xlane.xlu0 %622 }
 0x270   : > { %v848_v56 = vmul.f32 %v2537_v30, %v623_v36 }
 0x272   : > { %719 = vadd.xlane.f32.xlu2 %v718_v37  ;;  %v2575_v58 = vadd.f32 1.0, %v848_v56 }
 0x273   : > { %722 = vadd.xlane.f32.xlu1 %v721_v39  ;;  %v2569_v54 = vpop.permute.xlu1 %809 }
 0x277   : > { %v641_v43 = vpop.xlane.xlu0 %640 }
 0x278   : > { %v854_v1 = vmul.f32 %v2521_v17, %v641_v43 }
 0x27a   : > { %725 = vadd.xlane.f32.xlu2 %v724_v42  ;;  %v2590_v8 = vadd.f32 1.0, %v854_v1 }
 0x27b   : > { %v2584_v63 = vpop.permute.xlu1 %822 }
 0x282   : > { %v2552_v45 = vpop.xlane.xlu0 %661 }
 0x28a   : > { %v2558_v48 = vpop.xlane.xlu0 %680 }
 0x28d   : > { %v620_v51 = vpop.xlane.xlu2 %619 }
 0x28e   : > { %v847_v52 = vmul.f32 %v2541_v38, %v620_v51 }
 0x290   : > { %v2563_v18 = vadd.f32 1.0, %v847_v52 }
 0x292   : > { %v2565_v53 = vpop.xlane.xlu0 %683 }
 0x293   : > { %vm879_vm7 = vcmp.gt.f32.partialorder %v2563_v18, %v2565_v53 }
 0x294   : > { %v895_v55 = vsel %vm879_vm7, %v620_v51, 0.0 }
 0x295   : > { %v626_v57 = vpop.xlane.xlu2 %625  ;;  %930 = vperm.xlu0 %1991, %v895_v55  }
 0x296   : > { %v849_v5 = vmul.f32 %v2548_v13, %v626_v57 }
 0x298   : > { %v2607_v20 = vadd.f32 1.0, %v849_v5 }
 0x29a   : > { %v2577_v60 = vpop.xlane.xlu0 %686 }
 0x29b   : > { %vm880_vm8 = vcmp.gt.f32.partialorder %v2575_v58, %v2577_v60 }
 0x29c   : > { %v896_v61 = vsel %vm880_vm8, %v623_v36, 0.0 }
 0x29d   : > { %v632_v62 = vpop.xlane.xlu2 %631  ;;  %933 = vperm.xlu2 %1992, %v896_v61  }
 0x29e   : > { %v851_v28 = vmul.f32 %v2514_v10, %v632_v62 }
 0x2a0   : > { %v2617_v3 = vadd.f32 1.0, %v851_v28 }
 0x2a2   : > { %v2586_v0 = vpop.xlane.xlu0 %689 }
 0x2a3   : > { %vm881_vm11 = vcmp.gt.f32.partialorder %v2607_v20, %v2586_v0 }
 0x2a4   : > { %v897_v21 = vsel %vm881_vm11, %v626_v57, 0.0  ;;  %v1023_v18 = vsel %vm881_vm11, %v2548_v13, 0.0  ;;  %vm1010_vm11 = vcmask 1045509  }
 0x2a5   : > { %v635_v2 = vpop.xlane.xlu2 %634 }
 0x2a6   : > { %v617_v6 = vpop.xlane.xlu1 %616 }
 0x2a7   : > { %v846_v7 = vmul.f32 %v2498_v59, %v617_v6 }
 0x2a9   : > { %v2592_v9 = vadd.f32 1.0, %v846_v7 }
 0x2aa   : > { %v2594_v11 = vpop.xlane.xlu0 %704 }
 0x2ab   : > { %vm886_vm9 = vcmp.gt.f32.partialorder %v2590_v8, %v2594_v11  ;;  %vm878_vm10 = vcmp.gt.f32.partialorder %v2592_v9, %v2558_v48 }
 0x2ac   : > { %v902_v12 = vsel %vm886_vm9, %v641_v43, 0.0  ;;  %v894_v14 = vsel %vm878_vm10, %v617_v6, 0.0  ;;  %v852_v43 = vmul.f32 %v2554_v46, %v635_v2 }
 0x2ad   : > { %v644_v16 = vpop.xlane.xlu2 %643  ;;  %927 = vperm.xlu1 %1990, %v894_v14   ;;  %951 = vperm.xlu0 %1991, %v902_v12  }
 0x2ae   : > { %v629_v19 = vpop.xlane.xlu1 %628  ;;  %v868_v61 = vadd.f32 1.0, %v852_v43 }
 0x2af   : > { %v850_v36 = vmul.f32 %v2508_v4, %v629_v19 }
 0x2b1   : > { %v866_v39 = vadd.f32 1.0, %v850_v36 }
 0x2b2   : > { %v708_v28 = vpop.xlane.xlu0 %707 }
 0x2b5   : > { %v650_v22 = vpop.xlane.xlu2 %649  ;;  %936 = vperm.xlu1 %1990, %v897_v21  }
 0x2b6   : > { %v638_v23 = vpop.xlane.xlu1 %637  ;;  %v857_v55 = vmul.f32 %v2528_v24, %v650_v22 }
 0x2b7   : > { %v853_v37 = vmul.f32 %v2544_v40, %v638_v23 }
 0x2b8   : > { %v2644_v1 = vadd.f32 1.0, %v857_v55 }
 0x2b9   : > { %v2630_v41 = vadd.f32 1.0, %v853_v37 }
 0x2bd   : > { %v2614_v25 = vpop.xlane.xlu2 %652 }
 0x2be   : > { %v647_v26 = vpop.xlane.xlu1 %646 }
 0x2bf   : > { %v856_v57 = vmul.f32 %v2550_v44, %v647_v26 }
 0x2c1   : > { %v872_v6 = vadd.f32 1.0, %v856_v57  ;;  %v717_v57 = vpop.xlane.xlu0 %716 }
 0x2c5   : > { %v656_v29 = vpop.xlane.xlu2 %655 }
 0x2c6   : > { %v2619_v32 = vpop.xlane.xlu1 %695  ;;  %v859_v21 = vmul.f32 %v2556_v47, %v656_v29 }
 0x2c7   : > { %vm883_vm12 = vcmp.gt.f32.partialorder %v2617_v3, %v2619_v32 }
 0x2c8   : > { %v899_v33 = vsel %vm883_vm12, %v632_v62, 0.0  ;;  %v855_v62 = vmul.f32 %v2560_v50, %v644_v16  ;;  %v875_v36 = vadd.f32 1.0, %v859_v21 }
 0x2c9   : > { %942 = vperm.xlu1 %1990, %v899_v33  }
 0x2cd   : > { %v659_v34 = vpop.xlane.xlu2 %658 }
 0x2ce   : > { %v2626_v35 = vpop.xlane.xlu1 %698  ;;  %v860_v33 = vmul.f32 %v2584_v63, %v659_v34 }
 0x2cf   : > { %vm884_vm15 = vcmp.gt.f32.partialorder %v868_v61, %v2626_v35 }
 0x2d0   : > { %v900_v12 = vsel %vm884_vm15, %v635_v2, 0.0  ;;  %v858_v2 = vmul.f32 %v2569_v54, %v2614_v25  ;;  %v876_v37 = vadd.f32 1.0, %v860_v33 }
 0x2d5   : > { %v693_v42 = vpop.xlane.xlu2 %692 }
 0x2d6   : > { %vm882_vm13 = vcmp.gt.f32.partialorder %v866_v39, %v693_v42  ;;  %v2633_v51 = vpop.xlane.xlu1 %701 }
 0x2d7   : > { %v898_v52 = vsel %vm882_vm13, %v629_v19, 0.0  ;;  %vm885_vm14 = vcmp.gt.f32.partialorder %v2630_v41, %v2633_v51  ;;  %v871_v19 = vadd.f32 1.0, %v855_v62  ;;  %v861_v62 = vmul.f32 %v2533_v31, %v2552_v45 }
 0x2d8   : > { %v901_v56 = vsel %vm885_vm14, %v638_v23, 0.0  ;;  %939 = vperm.xlu2 %1992, %v898_v52   ;;  %v1027_v13 = vsel %vm885_vm14, %v2544_v40, 0.0  ;;  %v1028_v40 = vsel %vm886_vm9, %v2521_v17, 0.0  ;;  %vm1006_vm9 = vcmask 1043459  }
 0x2d9   : > { %948 = vperm.xlu1 %1990, %v901_v56   ;;  %vm887_vm3 = vcmp.gt.f32.partialorder %v871_v19, %v708_v28  ;;  %vm2915_vm14 = vcmask 130048  }
 0x2da   : > { %v903_v52 = vsel %vm887_vm3, %v644_v16, 0.0  ;;  %v1021_v16 = vsel %vm879_vm7, %v2541_v38, 0.0  ;;  %v1024_v38 = vsel %vm882_vm13, %v2508_v4, 0.0  ;;  %v1025_v4 = vsel %vm883_vm12, %v2514_v10, 0.0 }
 0x2db   : > { %vm1002_vm7 = vcmask 1041409   ;;  %vm1012_vm12 = vcmask 1046534   ;;  %vm1014_vm13 = vcmask 1047559  }
 0x2dd   : > { %v2647_v7 = vpop.xlane.xlu2 %713 }
 0x2de   : > { %vm889_vm0 = vcmp.gt.f32.partialorder %v2644_v1, %v2647_v7  ;;  %v711_v5 = vpop.xlane.xlu1 %710 }
 0x2df   : > { %v905_v14 = vsel %vm889_vm0, %v650_v22, 0.0  ;;  %vm888_vm2 = vcmp.gt.f32.partialorder %v872_v6, %v711_v5 }
 0x2e0   : > { %v904_v23 = vsel %vm888_vm2, %v647_v26, 0.0  ;;  %945 = vperm.xlu2 %1992, %v900_v12   ;;  %960 = vperm.xlu0 %1991, %v905_v14   ;;  %v874_v26 = vadd.f32 1.0, %v858_v2  ;;  %v877_v14 = vadd.f32 1.0, %v861_v62  ;;  %v1030_v48 = vsel %vm888_vm2, %v2550_v44, 0.0 }
 0x2e1   : > { %957 = vperm.xlu1 %1990, %v904_v23   ;;  %v1031_v44 = vsel %vm889_vm0, %v2528_v24, 0.0 }
 0x2e2   : > { %vm890_vm6 = vcmp.gt.f32.partialorder %v874_v26, %v717_v57 }
 0x2e3   : > { %v906_v12 = vsel %vm890_vm6, %v2614_v25, 0.0  ;;  %v1032_v10 = vsel %vm890_vm6, %v2569_v54, 0.0  ;;  %v2720_v25 = vand.u32 127, %v440_v27 }
 0x2e5   : > { %v720_v43 = vpop.xlane.xlu2 %719 }
 0x2e6   : > { %vm891_vm4 = vcmp.gt.f32.partialorder %v875_v36, %v720_v43  ;;  %v723_v22 = vpop.xlane.xlu1 %722 }
 0x2e7   : > { %v907_v55 = vsel %vm891_vm4, %v656_v29, 0.0  ;;  %vm892_vm5 = vcmp.gt.f32.partialorder %v876_v37, %v723_v22  ;;  %v1020_v29 = vsel %vm878_vm10, %v2498_v59, 0.0  ;;  %v1022_v59 = vsel %vm880_vm8, %v2537_v30, 0.0 }
 0x2e8   : > { %v908_v56 = vsel %vm892_vm5, %v659_v34, 0.0  ;;  %954 = vperm.xlu2 %1992, %v903_v52   ;;  %v1029_v30 = vsel %vm887_vm3, %v2560_v50, 0.0  ;;  %v1034_v17 = vsel %vm892_vm5, %v2584_v63, 0.0  ;;  %vm1004_vm8 = vcmask 1042434   ;;  %vm2917_vm5 = vmmov %vm2915_vm14 }
 0x2e9   : > { %966 = vperm.xlu1 %1990, %v907_v55   ;;  %969 = vperm.xlu0 %1991, %v908_v56   ;;  %vm1008_vm10 = vcmask 1044484   ;;  %vm2918_vm6 = vmmov %vm2917_vm5 }
 0x2ed   : > { %v726_v34 = vpop.xlane.xlu2 %725 }
 0x2ee   : > { %vm893_vm1 = vcmp.gt.f32.partialorder %v877_v14, %v726_v34 }
 0x2ef   : > { %v909_v21 = vsel %vm893_vm1, %v2552_v45, 0.0  ;;  %v1026_v45 = vsel %vm884_vm15, %v2554_v46, 0.0  ;;  %v1033_v46 = vsel %vm891_vm4, %v2556_v47, 0.0  ;;  %v1035_v50 = vsel %vm893_vm1, %v2533_v31, 0.0  ;;  %vm2916_vm15 = vmmov %vm2915_vm14 }
 0x2f0   : > { %963 = vperm.xlu2 %1992, %v906_v12   ;;  %v2723_v31 = vadd.s32 4294967288, %v2720_v25  ;;  %vm979_vm1 = vcmask 130112  }
 0x2f1   : > { %1053 = vperm.xlu1 %1990, %v1020_v29   ;;  %1056 = vperm.xlu0 %1991, %v1021_v16  }
 0x2f7   : > { %v934_v47 = vpop.permute.xlu2 %933 }
 0x2f8   : > { %972 = vperm.xlu2 %1992, %v909_v21   ;;  %v981_v39 = vperm.slane %v934_v47, %v2720_v25 }
 0x2f9   : > { %1062 = vperm.xlu1 %1990, %v1023_v18   ;;  %1065 = vperm.xlu0 %1991, %v1024_v38  }
 0x300   : > { %1059 = vperm.xlu2 %1992, %v1022_v59  }
 0x301   : > { %1071 = vperm.xlu1 %1990, %v1026_v45   ;;  %1074 = vperm.xlu0 %1991, %v1027_v13  }
 0x307   : > { %v931_v0 = vpop.permute.xlu0 %930 }
 0x308   : > { %1068 = vperm.xlu2 %1992, %v1025_v4   ;;  %v978_v51 = vperm.slane %v931_v0, %v2723_v31 }
 0x309   : > { %1083 = vperm.xlu0 %1991, %v1030_v48   ;;  %1080 = vperm.xlu1 %1990, %v1029_v30  }
 0x310   : > { %1077 = vperm.xlu2 %1992, %v1028_v40  }
 0x311   : > { %1092 = vperm.xlu0 %1991, %v1033_v46   ;;  %1089 = vperm.xlu1 %1990, %v1032_v10  }
 0x318   : > { %1086 = vperm.xlu2 %1992, %v1031_v44  }
 0x319   : > { %1098 = vperm.xlu1 %1990, %v1035_v50  }
 0x31f   : > { %v928_v53 = vpop.permute.xlu1 %927  ;;  %v952_v11 = vpop.permute.xlu0 %951 }
 0x320   : > { %1095 = vperm.xlu2 %1992, %v1034_v17   ;;  %v976_v3 = vperm.slane %v928_v53, %v2720_v25  ;;  %v990_v36 = vperm.slane %v952_v11, %v2720_v25 }
 0x322   : > { %v980_v6 = vsel %vm979_vm1, %v978_v51, %v976_v3 }
 0x327   : > { %v937_v60 = vpop.permute.xlu1 %936 }
 0x328   : > { %v982_v63 = vperm.slane %v937_v60, %v2723_v31 }
 0x32a   : > { %v983_v61 = vsel %vm979_vm1, %v982_v63, %v981_v39 }
 0x32b   : > { %v1003_v2 = vsel %vm1002_vm7, %v983_v61, %v980_v6 }
 0x332   : > { %v940_v58 = vpop.permute.xlu2 %939 }
 0x333   : > { %v984_v27 = vperm.slane %v940_v58, %v2720_v25 }
 0x33a   : > { %v946_v54 = vpop.permute.xlu2 %945 }
 0x33b   : > { %v943_v9 = vpop.permute.xlu1 %942  ;;  %v987_v1 = vperm.slane %v946_v54, %v2720_v25 }
 0x33c   : > { %v985_v32 = vperm.slane %v943_v9, %v2723_v31 }
 0x33e   : > { %v986_v7 = vsel %vm979_vm1, %v985_v32, %v984_v27 }
 0x33f   : > { %v1005_v37 = vsel %vm1004_vm8, %v986_v7, %v1003_v2 }
 0x342   : > { %v955_v8 = vpop.permute.xlu2 %954 }
 0x343   : > { %v991_v19 = vperm.slane %v955_v8, %v2723_v31 }
 0x345   : > { %v992_v22 = vsel %vm979_vm1, %v991_v19, %v990_v36 }
 0x34a   : > { %v964_v24 = vpop.permute.xlu2 %963 }
 0x34b   : > { %v949_v20 = vpop.permute.xlu1 %948  ;;  %v996_v56 = vperm.slane %v964_v24, %v2720_v25 }
 0x34c   : > { %v988_v41 = vperm.slane %v949_v20, %v2723_v31 }
 0x34e   : > { %v989_v23 = vsel %vm979_vm1, %v988_v41, %v987_v1 }
 0x34f   : > { %v1007_v43 = vsel %vm1006_vm9, %v989_v23, %v1005_v37 }
 0x350   : > { %v1009_v16 = vsel %vm1008_vm10, %v992_v22, %v1007_v43 }
 0x352   : > { %v961_v35 = vpop.permute.xlu0 %960  ;;  %v973_v5 = vpop.permute.xlu2 %972 }
 0x353   : > { %v958_v42 = vpop.permute.xlu1 %957  ;;  %v994_v28 = vperm.slane %v961_v35, %v2723_v31  ;;  %v1000_v57 = vperm.slane %v973_v5, %v2723_v31 }
 0x354   : > { %v993_v33 = vperm.slane %v958_v42, %v2720_v25 }
 0x356   : > { %v995_v52 = vsel %vm979_vm1, %v994_v28, %v993_v33 }
 0x357   : > { %v1011_v14 = vsel %vm1010_vm11, %v995_v52, %v1009_v16 }
 0x35a   : > { %v1060_v18 = vpop.permute.xlu2 %1059 }
 0x35b   : > { %v967_v55 = vpop.permute.xlu1 %966  ;;  %v970_v26 = vpop.permute.xlu0 %969  ;;  %v1103_v53 = vperm.slane %v1060_v18, %v2720_v25 }
 0x35c   : > { %v997_v62 = vperm.slane %v967_v55, %v2723_v31  ;;  %v999_v12 = vperm.slane %v970_v26, %v2720_v25 }
 0x35e   : > { %v998_v29 = vsel %vm979_vm1, %v997_v62, %v996_v56  ;;  %v1001_v34 = vsel %vm979_vm1, %v1000_v57, %v999_v12  ;;  %v1155_v56 = vld [vmem:[#allocation5 + $0x8] sm:$0xff]  ;;  %v1157_v57 = vld [vmem:[#allocation5 + $0x18] sm:$0xff]  ;;  %v1156_v62 = vld [vmem:[#allocation5 + $0x10] sm:$0xff] }
 0x35f   : > { %v1013_v21 = vsel %vm1012_vm12, %v998_v29, %v1011_v14  ;;  %1176 = vmatpush.msra.mxu1 %v1155_v56  ;;  %1230 = vmatpush.msra.mxu2 %v1157_v57  ;;  %v1291_v56 = vld [vmem:[#allocation5 + $0x20] sm:$0xff] }
 0x360   : > { %v1015_v38 = vsel %vm1014_vm13, %v1001_v34, %v1013_v21 }
 0x361   : > { %v1017_v59 = vsel %vm2915_vm14, %v1015_v38, -inf  ;;  %1231 = vmatpush.msra.mxu2 %v1156_v62 }
 0x362   : > { %1018 = vmax.xlane.f32.xlu0 %v1017_v59  ;;  %v1069_v4 = vpop.permute.xlu2 %1068 }
 0x363   : > { %v1054_v45 = vpop.permute.xlu1 %1053  ;;  %v1057_v13 = vpop.permute.xlu0 %1056  ;;  %v1107_v11 = vperm.slane %v1069_v4, %v2723_v31 }
 0x364   : > { %v1100_v58 = vperm.slane %v1054_v45, %v2720_v25  ;;  %v1101_v54 = vperm.slane %v1057_v13, %v2723_v31 }
 0x366   : > { %v1102_v63 = vsel %vm979_vm1, %v1101_v54, %v1100_v58 }
 0x36a   : > { %v1078_v10 = vpop.permute.xlu2 %1077 }
 0x36b   : > { %v1063_v30 = vpop.permute.xlu1 %1062  ;;  %v1066_v48 = vpop.permute.xlu0 %1065  ;;  %v1112_v32 = vperm.slane %v1078_v10, %v2720_v25 }
 0x36c   : > { %v1104_v17 = vperm.slane %v1063_v30, %v2723_v31  ;;  %v1106_v60 = vperm.slane %v1066_v48, %v2720_v25  ;;  %v363_v48 = vld [vmem:[%s358_s30] sm:$0xff] }
 0x36e   : > { %v1105_v0 = vsel %vm979_vm1, %v1104_v17, %v1103_v53  ;;  %v1108_v39 = vsel %vm979_vm1, %v1107_v11, %v1106_v60 }
 0x36f   : > { %v1124_v35 = vsel %vm1002_vm7, %v1105_v0, %v1102_v63 }
 0x370   : > { %v1125_v1 = vsel %vm1004_vm8, %v1108_v39, %v1124_v35 }
 0x372   : > { %v1087_v47 = vpop.permute.xlu2 %1086 }
 0x373   : > { %v1072_v40 = vpop.permute.xlu1 %1071  ;;  %v1075_v46 = vpop.permute.xlu0 %1074  ;;  %v1116_v6 = vperm.slane %v1087_v47, %v2723_v31 }
 0x374   : > { %v1109_v8 = vperm.slane %v1072_v40, %v2720_v25  ;;  %v1110_v9 = vperm.slane %v1075_v46, %v2723_v31 }
 0x376   : > { %v1111_v41 = vsel %vm979_vm1, %v1110_v9, %v1109_v8 }
 0x377   : > { %v1126_v7 = vsel %vm1006_vm9, %v1111_v41, %v1125_v1 }
 0x37a   : > { %v1096_v5 = vpop.permute.xlu2 %1095 }
 0x37b   : > { %v1081_v44 = vpop.permute.xlu1 %1080  ;;  %v1084_v50 = vpop.permute.xlu0 %1083  ;;  %v1121_v2 = vperm.slane %v1096_v5, %v2720_v25 }
 0x37c   : > { %v1113_v20 = vperm.slane %v1081_v44, %v2723_v31  ;;  %v1115_v42 = vperm.slane %v1084_v50, %v2720_v25 }
 0x37e   : > { %v1114_v51 = vsel %vm979_vm1, %v1113_v20, %v1112_v32  ;;  %v1117_v23 = vsel %vm979_vm1, %v1116_v6, %v1115_v42 }
 0x37f   : > { %v1127_v19 = vsel %vm1008_vm10, %v1114_v51, %v1126_v7 }
 0x380   : > { %v1128_v37 = vsel %vm1010_vm11, %v1117_v23, %v1127_v19 }
 0x383   : > { %v1090_v24 = vpop.permute.xlu1 %1089  ;;  %v1093_v3 = vpop.permute.xlu0 %1092 }
 0x384   : > { %v1118_v27 = vperm.slane %v1090_v24, %v2720_v25  ;;  %v1119_v61 = vperm.slane %v1093_v3, %v2723_v31  ;;  %v1154_v25 = vld [vmem:[#allocation5] sm:$0xff] }
 0x385   : > { %1177 = vmatpush.msra.mxu1 %v1154_v25 }
 0x386   : > { %v1120_v28 = vsel %vm979_vm1, %v1119_v61, %v1118_v27 }
 0x387   : > { %v1129_v22 = vsel %vm1012_vm12, %v1120_v28, %v1128_v37 }
 0x38b   : > { %v1099_v33 = vpop.permute.xlu1 %1098 }
 0x38c   : > { %v1122_v36 = vperm.slane %v1099_v33, %v2723_v31 }
 0x38e   : > { %v1123_v43 = vsel %vm979_vm1, %v1122_v36, %v1121_v2  ;;  %vm2919_vm1 = vmmov %vm2917_vm5 }
 0x38f   : > { %v1130_v52 = vsel %vm1014_vm13, %v1123_v43, %v1129_v22  ;;  %vm2920_vm7 = vmmov %vm2919_vm1 }
 0x390   : > { %v1132_v55 = vsel %vm2916_vm15, %v1130_v52, 0.0  ;;  %vm2921_vm8 = vmmov %vm2919_vm1  ;;  %v1294_v52 = vld [vmem:[#allocation5 + $0x38] sm:$0xff] }
 0x391   : > { %1133 = vadd.xlane.f32.xlu2 %v1132_v55  ;;  %vm2922_vm9 = vmmov %vm2919_vm1  ;;  %v1293_v55 = vld [vmem:[#allocation5 + $0x30] sm:$0xff]  ;;  %1368 = vmatpush.msrb.mxu0 %v1294_v52 }
 0x393   : > { %1369 = vmatpush.msrb.mxu0 %v1293_v55 }
 0x3d5   : > { %v1019_v26 = vpop.xlane.xlu0 %1018 }
 0x3d6   : > { %1997 = vrcp.f32 %v1019_v26  ;;  %v1147_v14 = vand.u32 2147483648, %v1019_v26  ;;  %vm1141_vm2 = vweird.f32 %v1019_v26  ;;  %v1145_v21 = vand.u32 2147483647, %v1019_v26 }
 0x3d8   : > { %v1148_v38 = vor.u32 1.1754944e-38, %v1147_v14  ;;  %vm1146_vm4 = vcmp.eq.f32.partialorder %v1145_v21, 8.507059e+37 }
 0x3dc   : > { %v1998_v31 = vpop.eup %1997 }
 0x3dd   : > { %v1137_v12 = vmul.f32 %v1998_v31, %v1019_v26  ;;  %vm1142_vm0 = vweird.f32 %v1998_v31  ;;  %v1292_v26 = vld [vmem:[#allocation5 + $0x28] sm:$0xff] }
 0x3de   : > { %vm1143_vm3 = vmor %vm1141_vm2, %vm1142_vm0  ;;  %1314 = vmatpush.msra.mxu3 %v1292_v26 }
 0x3df   : > { %v1138_v16 = vsub.f32 1.0, %v1137_v12 }
 0x3e0   : > { %1315 = vmatpush.msra.mxu3 %v1291_v56 }
 0x3e1   : > { %v1139_v29 = vmul.f32 %v1998_v31, %v1138_v16 }
 0x3e3   : > { %v1140_v34 = vadd.f32 %v1998_v31, %v1139_v29  ;;  %v1158_v29 = vld [vmem:[#allocation7] sm:$0xf] }
 0x3e4   : > { %v1266_v21 = vperm.slane %v1158_v29, 2 }
 0x3e5   : > { %v1144_v18 = vsel %vm1143_vm3, %v1998_v31, %v1140_v34 }
 0x3e6   : > { %v1149_v13 = vsel %vm1146_vm4, %v1148_v38, %v1144_v18 }
 0x404   : > { %v1134_v59 = vpop.xlane.xlu2 %1133 }
 0x405   : > { %v1877_v45 = vadd.f32 -1.0, %v1134_v59  ;;  %v1268_v59 = vperm.slane %v1158_v29, 3 }
 0x407   : > { %v1150_v4 = vmul.f32 %v1877_v45, %v1149_v13 }
 0x409   : > { %v1151_v30 = vsub.f32 %v2392_v49, %v1150_v4 }
 0x40b   : > { %v1152_v40 = vmax.f32 %v1151_v30, 0.0 }
 0x40d   : > { %1711 = vrot.lane.b32.xlu1 %v1152_v40, %s2202_s19  ;;  %v1153_v46 = vmul.f32 %v1152_v40, %v363_v48 }
 0x40f   : > { %1878 = vmatmul.msk.f32.vlgmr.msra.gmra.mxu1 %vm2917_vm5, %v1153_v46  ;;  %1879 = vmatmul.msk.f32.vlgmr.msra.gmra.mxu2 %vm2918_vm6, %v1153_v46  ;;  %vm2923_vm5 = vmmov %vm2919_vm1 }
 0x410   : > { %vm2924_vm6 = vmmov %vm2919_vm1 }
 0x48c   : > { %v1179_v10 = vpop.f32.mrf.mxu1 }
 0x48d   : > { %v1182_v44 = vsel %vm2919_vm1, %v1179_v10, 0.0 }
 0x48e   : > { %v1183_v50 = vrot.slane %v1182_v44, 4 }
 0x490   : > { %v1184_v17 = vadd.f32 %v1183_v50, %v1182_v44 }
 0x492   : > { %v1185_v47 = vrot.slane %v1184_v17, 2  ;;  %v1233_v53 = vpop.f32.mrf.mxu2 }
 0x493   : > { %v1236_v58 = vsel %vm2920_vm7, %v1233_v53, 0.0  ;;  %vm2925_vm7 = vmmov %vm2919_vm1 }
 0x494   : > { %v1186_v54 = vadd.f32 %v1185_v47, %v1184_v17  ;;  %v1237_v49 = vrot.slane %v1236_v58, 4 }
 0x496   : > { %v1187_v60 = vrot.slane %v1186_v54, 1  ;;  %v1238_v0 = vadd.f32 %v1237_v49, %v1236_v58  ;;  %v1212_v58 = vperm.slane %v1158_v29, 0 }
 0x498   : > { %v1188_v8 = vadd.f32 %v1187_v60, %v1186_v54  ;;  %v1239_v9 = vrot.slane %v1238_v0, 2  ;;  %v1214_v60 = vperm.slane %v1158_v29, 1 }
 0x49a   : > { %v1189_v11 = vmul.f32 %v1188_v8, %v2373_v15  ;;  %v1240_v20 = vadd.f32 %v1239_v9, %v1238_v0 }
 0x49c   : > { %v2800_v24 = vsub.f32 %v1179_v10, %v1189_v11  ;;  %v1241_v63 = vrot.slane %v1240_v20, 1 }
 0x49e   : > { %v1191_v3 = vmul.f32 %v2800_v24, %v2800_v24  ;;  %v1242_v32 = vadd.f32 %v1241_v63, %v1240_v20 }
 0x4a0   : > { %v1192_v35 = vsel %vm2921_vm8, %v1191_v3, 0.0  ;;  %v1243_v39 = vmul.f32 %v1242_v32, %v2373_v15  ;;  %vm2926_vm8 = vmmov %vm2919_vm1 }
 0x4a1   : > { %v1193_v41 = vrot.slane %v1192_v35, 4 }
 0x4a2   : > { %v1244_v42 = vsub.f32 %v1233_v53, %v1243_v39 }
 0x4a3   : > { %v1194_v27 = vadd.f32 %v1193_v41, %v1192_v35 }
 0x4a4   : > { %v1245_v51 = vmul.f32 %v1244_v42, %v1244_v42 }
 0x4a5   : > { %v1195_v6 = vrot.slane %v1194_v27, 2 }
 0x4a6   : > { %v1246_v61 = vsel %vm2922_vm9, %v1245_v51, 0.0  ;;  %vm2927_vm9 = vmmov %vm2919_vm1 }
 0x4a7   : > { %v1247_v1 = vrot.slane %v1246_v61, 4  ;;  %v1196_v19 = vadd.f32 %v1195_v6, %v1194_v27 }
 0x4a9   : > { %v1248_v7 = vadd.f32 %v1247_v1, %v1246_v61  ;;  %v1197_v33 = vrot.slane %v1196_v19, 1 }
 0x4ab   : > { %v1249_v5 = vrot.slane %v1248_v7, 2  ;;  %v1198_v37 = vadd.f32 %v1197_v33, %v1196_v19 }
 0x4ad   : > { %v1250_v23 = vadd.f32 %v1249_v5, %v1248_v7  ;;  %v1199_v22 = vmul.f32 %v1198_v37, %v2373_v15 }
 0x4af   : > { %v1251_v28 = vrot.slane %v1250_v23, 1  ;;  %v1200_v25 = vadd.f32 1e-05, %v1199_v22 }
 0x4b1   : > { %v1252_v2 = vadd.f32 %v1251_v28, %v1250_v23  ;;  %vm1207_vm14 = vweird.f32 %v1200_v25 }
 0x4b3   : > { %v1253_v36 = vmul.f32 %v1252_v2, %v2373_v15 }
 0x4b5   : > { %v1254_v43 = vadd.f32 1e-05, %v1253_v36 }
 0x4b7   : > { %1999 = vrsqrt.f32 %v1254_v43  ;;  %vm1261_vm11 = vweird.f32 %v1254_v43 }
 0x4b8   : > { %2001 = vrsqrt.f32 %v1200_v25 }
 0x4bd   : > { %v2000_v57 = vpop.eup %1999 }
 0x4be   : > { %v1256_v62 = vmul.f32 %v2000_v57, %v1254_v43  ;;  %vm1262_vm10 = vweird.f32 %v2000_v57  ;;  %v2002_v14 = vpop.eup %2001 }
 0x4bf   : > { %vm1263_vm12 = vmor %vm1261_vm11, %vm1262_vm10  ;;  %v1202_v45 = vmul.f32 %v2002_v14, %v1200_v25  ;;  %vm1208_vm13 = vweird.f32 %v2002_v14 }
 0x4c0   : > { %v1257_v31 = vmul.f32 %v2000_v57, %v1256_v62  ;;  %vm1209_vm15 = vmor %vm1207_vm14, %vm1208_vm13 }
 0x4c1   : > { %v1203_v30 = vmul.f32 %v2002_v14, %v1202_v45 }
 0x4c2   : > { %v1258_v12 = vmul.f32 0.5, %v1257_v31 }
 0x4c3   : > { %v1204_v40 = vmul.f32 0.5, %v1203_v30 }
 0x4c4   : > { %v1259_v16 = vsub.f32 1.5, %v1258_v12 }
 0x4c5   : > { %v1205_v46 = vsub.f32 1.5, %v1204_v40 }
 0x4c6   : > { %v1260_v34 = vmul.f32 %v2000_v57, %v1259_v16 }
 0x4c7   : > { %v1206_v50 = vmul.f32 %v2002_v14, %v1205_v46 }
 0x4c8   : > { %v1264_v18 = vsel %vm1263_vm12, %v2000_v57, %v1260_v34 }
 0x4c9   : > { %v1265_v38 = vmul.f32 %v1264_v18, %v1244_v42  ;;  %v1210_v17 = vsel %vm1209_vm15, %v2002_v14, %v1206_v50 }
 0x4ca   : > { %v1211_v53 = vmul.f32 %v1210_v17, %v2800_v24 }
 0x4cb   : > { %v1267_v13 = vmul.f32 %v1266_v21, %v1265_v38 }
 0x4cc   : > { %v1213_v8 = vmul.f32 %v1212_v58, %v1211_v53 }
 0x4cd   : > { %v1269_v4 = vadd.f32 %v1268_v59, %v1267_v13 }
 0x4ce   : > { %v1215_v3 = vadd.f32 %v1214_v60, %v1213_v8  ;;  %v1434_v8 = vld [vmem:[#allocation5 + $0x58] sm:$0xff] }
 0x4cf   : > { %v1880_v48 = vmul.f32 -1.442695, %v1269_v4  ;;  %1508 = vmatpush.msrb.mxu2 %v1434_v8 }
 0x4d1   : > { %2003 = vpow2.f32 %v1880_v48 }
 0x4d7   : > { %v2004_v10 = vpop.eup %2003 }
 0x4d8   : > { %v1273_v44 = vadd.f32 1.0, %v2004_v10 }
 0x4da   : > { %2005 = vrcp.f32 %v1273_v44  ;;  %v1285_v0 = vand.u32 2147483648, %v1273_v44  ;;  %v1283_v11 = vand.u32 2147483647, %v1273_v44  ;;  %vm1279_vm2 = vweird.f32 %v1273_v44 }
 0x4dc   : > { %v1286_v63 = vor.u32 1.1754944e-38, %v1285_v0  ;;  %vm1284_vm4 = vcmp.eq.f32.partialorder %v1283_v11, 8.507059e+37  ;;  %v1432_v11 = vld [vmem:[#allocation5 + $0x48] sm:$0xff] }
 0x4dd   : > { %1454 = vmatpush.msrb.mxu1 %v1432_v11 }
 0x4e0   : > { %v2006_v47 = vpop.eup %2005 }
 0x4e1   : > { %v1275_v54 = vmul.f32 %v2006_v47, %v1273_v44  ;;  %vm1280_vm0 = vweird.f32 %v2006_v47  ;;  %v1296_v44 = vld [vmem:[#allocation7 + $0x4] sm:$0xf] }
 0x4e2   : > { %vm1281_vm3 = vmor %vm1279_vm2, %vm1280_vm0  ;;  %v1404_v53 = vperm.slane %v1296_v44, 2 }
 0x4e3   : > { %v1276_v49 = vsub.f32 1.0, %v1275_v54 }
 0x4e5   : > { %v1277_v9 = vmul.f32 %v2006_v47, %v1276_v49  ;;  %v1406_v49 = vperm.slane %v1296_v44, 3 }
 0x4e7   : > { %v1278_v20 = vadd.f32 %v2006_v47, %v1277_v9  ;;  %v1433_v9 = vld [vmem:[#allocation5 + $0x50] sm:$0xff] }
 0x4e8   : > { %1509 = vmatpush.msrb.mxu2 %v1433_v9 }
 0x4e9   : > { %v1282_v32 = vsel %vm1281_vm3, %v2006_v47, %v1278_v20  ;;  %v1431_v20 = vld [vmem:[#allocation5 + $0x40] sm:$0xff] }
 0x4ea   : > { %v1287_v35 = vsel %vm1284_vm4, %v1286_v63, %v1282_v32  ;;  %1455 = vmatpush.msrb.mxu1 %v1431_v20 }
 0x4eb   : > { %v2810_v39 = vmul.f32 %v1287_v35, %v1215_v3 }
 0x4ed   : > { %1881 = vmatmul.msk.f32.vlgmr.msra.gmra.mxu3 %vm2923_vm5, %v2810_v39  ;;  %1882 = vmatmul.msk.f32.vlgmr.msrb.gmra.mxu0 %vm2924_vm6, %v2810_v39  ;;  %vm2928_vm5 = vmmov %vm2919_vm1 }
 0x4ee   : > { %vm2929_vm6 = vmmov %vm2919_vm1 }
 0x56a   : > { %v1371_v24 = vpop.f32.mrf.mxu0 }
 0x56b   : > { %v1374_v41 = vsel %vm2919_vm1, %v1371_v24, 0.0 }
 0x56c   : > { %v1375_v42 = vrot.slane %v1374_v41, 4 }
 0x56e   : > { %v1376_v51 = vadd.f32 %v1375_v42, %v1374_v41 }
 0x570   : > { %v1377_v27 = vrot.slane %v1376_v51, 2  ;;  %v1317_v61 = vpop.f32.mrf.mxu3 }
 0x571   : > { %v1320_v1 = vsel %vm2925_vm7, %v1317_v61, 0.0  ;;  %vm2930_vm7 = vmmov %vm2919_vm1 }
 0x572   : > { %v1378_v6 = vadd.f32 %v1377_v27, %v1376_v51  ;;  %v1321_v7 = vrot.slane %v1320_v1, 4 }
 0x574   : > { %v1379_v5 = vrot.slane %v1378_v6, 1  ;;  %v1322_v19 = vadd.f32 %v1321_v7, %v1320_v1 }
 0x576   : > { %v1380_v23 = vadd.f32 %v1379_v5, %v1378_v6  ;;  %v1323_v28 = vrot.slane %v1322_v19, 2  ;;  %v1350_v6 = vperm.slane %v1296_v44, 0 }
 0x578   : > { %v1381_v33 = vmul.f32 %v1380_v23, %v2373_v15  ;;  %v1324_v2 = vadd.f32 %v1323_v28, %v1322_v19  ;;  %v1352_v19 = vperm.slane %v1296_v44, 1 }
 0x57a   : > { %v1382_v36 = vsub.f32 %v1371_v24, %v1381_v33  ;;  %v1325_v37 = vrot.slane %v1324_v2, 1 }
 0x57c   : > { %v1383_v43 = vmul.f32 %v1382_v36, %v1382_v36  ;;  %v1326_v22 = vadd.f32 %v1325_v37, %v1324_v2 }
 0x57e   : > { %v1384_v52 = vsel %vm2926_vm8, %v1383_v43, 0.0  ;;  %v1327_v55 = vmul.f32 %v1326_v22, %v2373_v15  ;;  %vm2931_vm8 = vmmov %vm2919_vm1 }
 0x57f   : > { %v1385_v26 = vrot.slane %v1384_v52, 4 }
 0x580   : > { %v1328_v56 = vsub.f32 %v1317_v61, %v1327_v55 }
 0x581   : > { %v1386_v57 = vadd.f32 %v1385_v26, %v1384_v52 }
 0x582   : > { %v1329_v25 = vmul.f32 %v1328_v56, %v1328_v56 }
 0x583   : > { %v1387_v62 = vrot.slane %v1386_v57, 2 }
 0x584   : > { %v1330_v31 = vsel %vm2927_vm9, %v1329_v25, 0.0  ;;  %vm2932_vm9 = vmmov %vm2919_vm1 }
 0x585   : > { %v1388_v12 = vadd.f32 %v1387_v62, %v1386_v57  ;;  %v1331_v16 = vrot.slane %v1330_v31, 4 }
 0x587   : > { %v1389_v29 = vrot.slane %v1388_v12, 1  ;;  %v1332_v34 = vadd.f32 %v1331_v16, %v1330_v31 }
 0x589   : > { %v1390_v14 = vadd.f32 %v1389_v29, %v1388_v12  ;;  %v1333_v21 = vrot.slane %v1332_v34, 2 }
 0x58b   : > { %v1391_v18 = vmul.f32 %v1390_v14, %v2373_v15  ;;  %v1334_v38 = vadd.f32 %v1333_v21, %v1332_v34 }
 0x58d   : > { %v1392_v59 = vadd.f32 1e-05, %v1391_v18  ;;  %v1335_v45 = vrot.slane %v1334_v38, 1 }
 0x58f   : > { %2007 = vrsqrt.f32 %v1392_v59  ;;  %v1336_v13 = vadd.f32 %v1335_v45, %v1334_v38  ;;  %vm1399_vm11 = vweird.f32 %v1392_v59 }
 0x591   : > { %v1337_v4 = vmul.f32 %v1336_v13, %v2373_v15 }
 0x593   : > { %v1338_v48 = vadd.f32 1e-05, %v1337_v4 }
 0x595   : > { %v2008_v30 = vpop.eup %2007  ;;  %2009 = vrsqrt.f32 %v1338_v48  ;;  %vm1345_vm14 = vweird.f32 %v1338_v48 }
 0x596   : > { %v1394_v40 = vmul.f32 %v2008_v30, %v1392_v59  ;;  %vm1400_vm10 = vweird.f32 %v2008_v30 }
 0x597   : > { %vm1401_vm12 = vmor %vm1399_vm11, %vm1400_vm10 }
 0x598   : > { %v1395_v46 = vmul.f32 %v2008_v30, %v1394_v40 }
 0x59a   : > { %v1396_v10 = vmul.f32 0.5, %v1395_v46 }
 0x59b   : > { %v2010_v47 = vpop.eup %2009 }
 0x59c   : > { %v1397_v50 = vsub.f32 1.5, %v1396_v10  ;;  %v1340_v60 = vmul.f32 %v2010_v47, %v1338_v48  ;;  %vm1346_vm13 = vweird.f32 %v2010_v47 }
 0x59d   : > { %vm1347_vm15 = vmor %vm1345_vm14, %vm1346_vm13 }
 0x59e   : > { %v1398_v17 = vmul.f32 %v2008_v30, %v1397_v50  ;;  %v1341_v3 = vmul.f32 %v2010_v47, %v1340_v60 }
 0x5a0   : > { %v1402_v58 = vsel %vm1401_vm12, %v2008_v30, %v1398_v17  ;;  %v1342_v35 = vmul.f32 0.5, %v1341_v3 }
 0x5a1   : > { %v1403_v54 = vmul.f32 %v1402_v58, %v1382_v36 }
 0x5a2   : > { %v1343_v24 = vsub.f32 1.5, %v1342_v35 }
 0x5a3   : > { %v1405_v0 = vmul.f32 %v1404_v53, %v1403_v54 }
 0x5a4   : > { %v1344_v51 = vmul.f32 %v2010_v47, %v1343_v24 }
 0x5a5   : > { %v1407_v63 = vadd.f32 %v1406_v49, %v1405_v0 }
 0x5a6   : > { %v1348_v27 = vsel %vm1347_vm15, %v2010_v47, %v1344_v51  ;;  %v1574_v51 = vld [vmem:[#allocation5 + $0x78] sm:$0xff] }
 0x5a7   : > { %v1883_v32 = vmul.f32 -1.442695, %v1407_v63  ;;  %v1349_v1 = vmul.f32 %v1348_v27, %v1328_v56  ;;  %v1573_v27 = vld [vmem:[#allocation5 + $0x70] sm:$0xff]  ;;  %1648 = vmatpush.msra.mxu0 %v1574_v51 }
 0x5a9   : > { %2011 = vpow2.f32 %v1883_v32  ;;  %v1351_v28 = vmul.f32 %v1350_v6, %v1349_v1  ;;  %v1571_v6 = vld [vmem:[#allocation5 + $0x60] sm:$0xff]  ;;  %1649 = vmatpush.msra.mxu0 %v1573_v27 }
 0x5ab   : > { %v1353_v43 = vadd.f32 %v1352_v19, %v1351_v28 }
 0x5af   : > { %v2012_v41 = vpop.eup %2011 }
 0x5b0   : > { %v1411_v42 = vadd.f32 1.0, %v2012_v41 }
 0x5b2   : > { %2013 = vrcp.f32 %v1411_v42  ;;  %v1423_v23 = vand.u32 2147483648, %v1411_v42  ;;  %v1421_v2 = vand.u32 2147483647, %v1411_v42  ;;  %vm1417_vm2 = vweird.f32 %v1411_v42 }
 0x5b4   : > { %v1424_v37 = vor.u32 1.1754944e-38, %v1423_v23  ;;  %vm1422_vm4 = vcmp.eq.f32.partialorder %v1421_v2, 8.507059e+37 }
 0x5b8   : > { %v2014_v61 = vpop.eup %2013 }
 0x5b9   : > { %v1413_v7 = vmul.f32 %v2014_v61, %v1411_v42  ;;  %vm1418_vm0 = vweird.f32 %v2014_v61 }
 0x5ba   : > { %vm1419_vm3 = vmor %vm1417_vm2, %vm1418_vm0 }
 0x5bb   : > { %v1414_v5 = vsub.f32 1.0, %v1413_v7 }
 0x5bd   : > { %v1415_v33 = vmul.f32 %v2014_v61, %v1414_v5  ;;  %v1436_v5 = vld [vmem:[#allocation7 + $0x8] sm:$0xf] }
 0x5be   : > { %v1544_v28 = vperm.slane %v1436_v5, 2 }
 0x5bf   : > { %v1416_v36 = vadd.f32 %v2014_v61, %v1415_v33 }
 0x5c1   : > { %v1420_v22 = vsel %vm1419_vm3, %v2014_v61, %v1416_v36  ;;  %v1572_v61 = vld [vmem:[#allocation5 + $0x68] sm:$0xff]  ;;  %v1546_v36 = vperm.slane %v1436_v5, 3 }
 0x5c2   : > { %v1425_v52 = vsel %vm1422_vm4, %v1424_v37, %v1420_v22  ;;  %1594 = vmatpush.msrb.mxu3 %v1572_v61 }
 0x5c3   : > { %v1427_v55 = vmul.f32 %v1425_v52, %v1353_v43 }
 0x5c4   : > { %1595 = vmatpush.msrb.mxu3 %v1571_v6 }
 0x5c5   : > { %v1428_v26 = vadd.f32 %v1427_v55, %v2810_v39 }
 0x5c7   : > { %v2825_v56 = vmul.f32 0.70710677, %v1428_v26 }
 0x5c9   : > { %1884 = vmatmul.msk.f32.vlgmr.msrb.gmra.mxu1 %vm2928_vm5, %v2825_v56  ;;  %1885 = vmatmul.msk.f32.vlgmr.msrb.gmra.mxu2 %vm2929_vm6, %v2825_v56  ;;  %vm2933_vm5 = vmmov %vm2919_vm1 }
 0x5ca   : > { %vm2934_vm6 = vmmov %vm2919_vm1 }
 0x646   : > { %v1457_v57 = vpop.f32.mrf.mxu1 }
 0x647   : > { %v1460_v25 = vsel %vm2919_vm1, %v1457_v57, 0.0 }
 0x648   : > { %v1461_v62 = vrot.slane %v1460_v25, 4 }
 0x64a   : > { %v1462_v31 = vadd.f32 %v1461_v62, %v1460_v25 }
 0x64c   : > { %v1463_v12 = vrot.slane %v1462_v31, 2  ;;  %v1511_v16 = vpop.f32.mrf.mxu2 }
 0x64d   : > { %v1514_v29 = vsel %vm2930_vm7, %v1511_v16, 0.0  ;;  %vm2935_vm7 = vmmov %vm2919_vm1 }
 0x64e   : > { %v1464_v34 = vadd.f32 %v1463_v12, %v1462_v31  ;;  %v1515_v14 = vrot.slane %v1514_v29, 4 }
 0x650   : > { %v1465_v39 = vrot.slane %v1464_v34, 1  ;;  %v1516_v21 = vadd.f32 %v1515_v14, %v1514_v29 }
 0x652   : > { %v1466_v18 = vadd.f32 %v1465_v39, %v1464_v34  ;;  %v1517_v38 = vrot.slane %v1516_v21, 2  ;;  %v1490_v34 = vperm.slane %v1436_v5, 0 }
 0x654   : > { %v1467_v59 = vmul.f32 %v1466_v18, %v2373_v15  ;;  %v1518_v45 = vadd.f32 %v1517_v38, %v1516_v21  ;;  %v1492_v21 = vperm.slane %v1436_v5, 1 }
 0x656   : > { %v2834_v13 = vsub.f32 %v1457_v57, %v1467_v59  ;;  %v1519_v4 = vrot.slane %v1518_v45, 1 }
 0x658   : > { %v1469_v30 = vmul.f32 %v2834_v13, %v2834_v13  ;;  %v1520_v48 = vadd.f32 %v1519_v4, %v1518_v45 }
 0x65a   : > { %v1470_v40 = vsel %vm2931_vm8, %v1469_v30, 0.0  ;;  %v1521_v46 = vmul.f32 %v1520_v48, %v2373_v15  ;;  %vm2936_vm8 = vmmov %vm2919_vm1 }
 0x65b   : > { %v1471_v10 = vrot.slane %v1470_v40, 4 }
 0x65c   : > { %v1522_v44 = vsub.f32 %v1511_v16, %v1521_v46 }
 0x65d   : > { %v1472_v17 = vadd.f32 %v1471_v10, %v1470_v40 }
 0x65e   : > { %v1523_v50 = vmul.f32 %v1522_v44, %v1522_v44 }
 0x65f   : > { %v1473_v58 = vrot.slane %v1472_v17, 2 }
 0x660   : > { %v1524_v47 = vsel %vm2932_vm9, %v1523_v50, 0.0  ;;  %vm2937_vm9 = vmmov %vm2919_vm1 }
 0x661   : > { %v1525_v53 = vrot.slane %v1524_v47, 4  ;;  %v1474_v60 = vadd.f32 %v1473_v58, %v1472_v17 }
 0x663   : > { %v1526_v54 = vadd.f32 %v1525_v53, %v1524_v47  ;;  %v1475_v9 = vrot.slane %v1474_v60, 1 }
 0x665   : > { %v1527_v49 = vrot.slane %v1526_v54, 2  ;;  %v1476_v63 = vadd.f32 %v1475_v9, %v1474_v60 }
 0x667   : > { %v1528_v0 = vadd.f32 %v1527_v49, %v1526_v54  ;;  %v1477_v32 = vmul.f32 %v1476_v63, %v2373_v15 }
 0x669   : > { %v1529_v8 = vrot.slane %v1528_v0, 1  ;;  %v1478_v24 = vadd.f32 1e-05, %v1477_v32 }
 0x66b   : > { %v1530_v11 = vadd.f32 %v1529_v8, %v1528_v0  ;;  %vm1485_vm14 = vweird.f32 %v1478_v24 }
 0x66d   : > { %v1531_v20 = vmul.f32 %v1530_v11, %v2373_v15 }
 0x66f   : > { %v1532_v3 = vadd.f32 1e-05, %v1531_v20 }
 0x671   : > { %2015 = vrsqrt.f32 %v1532_v3  ;;  %vm1539_vm11 = vweird.f32 %v1532_v3 }
 0x672   : > { %2017 = vrsqrt.f32 %v1478_v24 }
 0x677   : > { %v2016_v35 = vpop.eup %2015 }
 0x678   : > { %v1534_v41 = vmul.f32 %v2016_v35, %v1532_v3  ;;  %vm1540_vm10 = vweird.f32 %v2016_v35  ;;  %v2018_v23 = vpop.eup %2017 }
 0x679   : > { %vm1541_vm12 = vmor %vm1539_vm11, %vm1540_vm10  ;;  %v1480_v37 = vmul.f32 %v2018_v23, %v1478_v24  ;;  %vm1486_vm13 = vweird.f32 %v2018_v23 }
 0x67a   : > { %v1535_v42 = vmul.f32 %v2016_v35, %v1534_v41  ;;  %vm1487_vm15 = vmor %vm1485_vm14, %vm1486_vm13 }
 0x67b   : > { %v1481_v52 = vmul.f32 %v2018_v23, %v1480_v37 }
 0x67c   : > { %v1536_v1 = vmul.f32 0.5, %v1535_v42 }
 0x67d   : > { %v1482_v26 = vmul.f32 0.5, %v1481_v52 }
 0x67e   : > { %v1537_v7 = vsub.f32 1.5, %v1536_v1 }
 0x67f   : > { %v1483_v57 = vsub.f32 1.5, %v1482_v26 }
 0x680   : > { %v1538_v19 = vmul.f32 %v2016_v35, %v1537_v7 }
 0x681   : > { %v1484_v31 = vmul.f32 %v2018_v23, %v1483_v57 }
 0x682   : > { %v1542_v33 = vsel %vm1541_vm12, %v2016_v35, %v1538_v19 }
 0x683   : > { %v1543_v2 = vmul.f32 %v1542_v33, %v1522_v44  ;;  %v1488_v12 = vsel %vm1487_vm15, %v2018_v23, %v1484_v31 }
 0x684   : > { %v1489_v29 = vmul.f32 %v1488_v12, %v2834_v13  ;;  %v1576_v12 = vld [vmem:[#allocation7 + $0xc] sm:$0xf] }
 0x685   : > { %v1545_v43 = vmul.f32 %v1544_v28, %v1543_v2 }
 0x686   : > { %v1491_v38 = vmul.f32 %v1490_v34, %v1489_v29 }
 0x687   : > { %v1547_v22 = vadd.f32 %v1546_v36, %v1545_v43 }
 0x688   : > { %v1493_v48 = vadd.f32 %v1492_v21, %v1491_v38 }
 0x689   : > { %v1886_v55 = vmul.f32 -1.442695, %v1547_v22 }
 0x68b   : > { %2019 = vpow2.f32 %v1886_v55 }
 0x691   : > { %v2020_v25 = vpop.eup %2019 }
 0x692   : > { %v1551_v62 = vadd.f32 1.0, %v2020_v25 }
 0x694   : > { %2021 = vrcp.f32 %v1551_v62  ;;  %v1563_v18 = vand.u32 2147483648, %v1551_v62  ;;  %v1561_v45 = vand.u32 2147483647, %v1551_v62  ;;  %vm1557_vm2 = vweird.f32 %v1551_v62 }
 0x696   : > { %v1564_v30 = vor.u32 1.1754944e-38, %v1563_v18  ;;  %vm1562_vm4 = vcmp.eq.f32.partialorder %v1561_v45, 8.507059e+37  ;;  %v1686_v18 = vperm.slane %v1576_v12, 3 }
 0x69a   : > { %v2022_v16 = vpop.eup %2021 }
 0x69b   : > { %v1553_v14 = vmul.f32 %v2022_v16, %v1551_v62  ;;  %vm1558_vm0 = vweird.f32 %v2022_v16 }
 0x69c   : > { %vm1559_vm3 = vmor %vm1557_vm2, %vm1558_vm0 }
 0x69d   : > { %v1554_v39 = vsub.f32 1.0, %v1553_v14  ;;  %v1684_v14 = vperm.slane %v1576_v12, 2 }
 0x69f   : > { %v1555_v59 = vmul.f32 %v2022_v16, %v1554_v39 }
 0x6a1   : > { %v1556_v4 = vadd.f32 %v2022_v16, %v1555_v59 }
 0x6a3   : > { %v1560_v40 = vsel %vm1559_vm3, %v2022_v16, %v1556_v4 }
 0x6a4   : > { %v1565_v46 = vsel %vm1562_vm4, %v1564_v30, %v1560_v40 }
 0x6a5   : > { %v1567_v10 = vmul.f32 %v1565_v46, %v1493_v48 }
 0x6a7   : > { %v1568_v13 = vadd.f32 %v1567_v10, %v2825_v56 }
 0x6a9   : > { %v2845_v44 = vmul.f32 0.70710677, %v1568_v13 }
 0x6ab   : > { %1887 = vmatmul.msk.f32.vlgmr.msrb.gmra.mxu3 %vm2933_vm5, %v2845_v44  ;;  %1888 = vmatmul.msk.f32.vlgmr.msra.gmra.mxu0 %vm2934_vm6, %v2845_v44  ;;  %vm1715_vm5 = vcmask 261120   ;;  %vm2938_vm6 = vmmov %vm2919_vm1 }
 0x728   : > { %v1651_v50 = vpop.f32.mrf.mxu0 }
 0x729   : > { %v1654_v17 = vsel %vm2919_vm1, %v1651_v50, 0.0 }
 0x72a   : > { %v1655_v47 = vrot.slane %v1654_v17, 4 }
 0x72c   : > { %v1656_v53 = vadd.f32 %v1655_v47, %v1654_v17  ;;  %v1630_v47 = vperm.slane %v1576_v12, 0 }
 0x72e   : > { %v1657_v58 = vrot.slane %v1656_v53, 2  ;;  %v1597_v54 = vpop.f32.mrf.mxu3 }
 0x72f   : > { %v1600_v49 = vsel %vm2935_vm7, %v1597_v54, 0.0 }
 0x730   : > { %v1658_v60 = vadd.f32 %v1657_v58, %v1656_v53  ;;  %v1601_v0 = vrot.slane %v1600_v49, 4 }
 0x732   : > { %v1659_v56 = vrot.slane %v1658_v60, 1  ;;  %v1602_v8 = vadd.f32 %v1601_v0, %v1600_v49 }
 0x734   : > { %v1660_v9 = vadd.f32 %v1659_v56, %v1658_v60  ;;  %v1603_v11 = vrot.slane %v1602_v8, 2 }
 0x736   : > { %v1661_v20 = vmul.f32 %v1660_v9, %v2373_v15  ;;  %v1604_v63 = vadd.f32 %v1603_v11, %v1602_v8 }
 0x738   : > { %v1662_v3 = vsub.f32 %v1651_v50, %v1661_v20  ;;  %v1605_v32 = vrot.slane %v1604_v63, 1 }
 0x73a   : > { %v1663_v35 = vmul.f32 %v1662_v3, %v1662_v3  ;;  %v1606_v24 = vadd.f32 %v1605_v32, %v1604_v63 }
 0x73c   : > { %v1664_v41 = vsel %vm2936_vm8, %v1663_v35, 0.0  ;;  %v1607_v42 = vmul.f32 %v1606_v24, %v2373_v15  ;;  %v1712_v24 = vpop.permute.xlu1 %1711 }
 0x73d   : > { %v1665_v51 = vrot.slane %v1664_v41, 4 }
 0x73e   : > { %v1608_v27 = vsub.f32 %v1597_v54, %v1607_v42  ;;  %v1632_v54 = vperm.slane %v1576_v12, 1 }
 0x73f   : > { %v1666_v61 = vadd.f32 %v1665_v51, %v1664_v41 }
 0x740   : > { %v1609_v1 = vmul.f32 %v1608_v27, %v1608_v27 }
 0x741   : > { %v1667_v6 = vrot.slane %v1666_v61, 2 }
 0x742   : > { %v1610_v7 = vsel %vm2937_vm9, %v1609_v1, 0.0 }
 0x743   : > { %v1668_v5 = vadd.f32 %v1667_v6, %v1666_v61  ;;  %v1611_v19 = vrot.slane %v1610_v7, 4 }
 0x745   : > { %v1669_v23 = vrot.slane %v1668_v5, 1  ;;  %v1612_v28 = vadd.f32 %v1611_v19, %v1610_v7 }
 0x747   : > { %v1670_v33 = vadd.f32 %v1669_v23, %v1668_v5  ;;  %v1613_v2 = vrot.slane %v1612_v28, 2 }
 0x749   : > { %v1671_v36 = vmul.f32 %v1670_v33, %v2373_v15  ;;  %v1614_v37 = vadd.f32 %v1613_v2, %v1612_v28 }
 0x74b   : > { %v1672_v43 = vadd.f32 1e-05, %v1671_v36  ;;  %v1615_v22 = vrot.slane %v1614_v37, 1 }
 0x74d   : > { %2023 = vrsqrt.f32 %v1672_v43  ;;  %v1616_v52 = vadd.f32 %v1615_v22, %v1614_v37  ;;  %vm1679_vm11 = vweird.f32 %v1672_v43 }
 0x74f   : > { %v1617_v55 = vmul.f32 %v1616_v52, %v2373_v15 }
 0x751   : > { %v1618_v57 = vadd.f32 1e-05, %v1617_v55 }
 0x753   : > { %v2024_v26 = vpop.eup %2023  ;;  %2025 = vrsqrt.f32 %v1618_v57  ;;  %vm1625_vm14 = vweird.f32 %v1618_v57 }
 0x754   : > { %v1674_v25 = vmul.f32 %v2024_v26, %v1672_v43  ;;  %vm1680_vm10 = vweird.f32 %v2024_v26 }
 0x755   : > { %vm1681_vm12 = vmor %vm1679_vm11, %vm1680_vm10 }
 0x756   : > { %v1675_v62 = vmul.f32 %v2024_v26, %v1674_v25 }
 0x758   : > { %v1676_v31 = vmul.f32 0.5, %v1675_v62 }
 0x759   : > { %v2026_v34 = vpop.eup %2025 }
 0x75a   : > { %v1677_v16 = vsub.f32 1.5, %v1676_v31  ;;  %v1620_v38 = vmul.f32 %v2026_v34, %v1618_v57  ;;  %vm1626_vm13 = vweird.f32 %v2026_v34 }
 0x75b   : > { %vm1627_vm15 = vmor %vm1625_vm14, %vm1626_vm13 }
 0x75c   : > { %v1678_v29 = vmul.f32 %v2024_v26, %v1677_v16  ;;  %v1621_v45 = vmul.f32 %v2026_v34, %v1620_v38 }
 0x75e   : > { %v1682_v39 = vsel %vm1681_vm12, %v2024_v26, %v1678_v29  ;;  %v1622_v30 = vmul.f32 0.5, %v1621_v45 }
 0x75f   : > { %v1683_v21 = vmul.f32 %v1682_v39, %v1662_v3 }
 0x760   : > { %v1623_v48 = vsub.f32 1.5, %v1622_v30 }
 0x761   : > { %v1685_v59 = vmul.f32 %v1684_v14, %v1683_v21 }
 0x762   : > { %v1624_v10 = vmul.f32 %v2026_v34, %v1623_v48 }
 0x763   : > { %v1687_v15 = vadd.f32 %v1686_v18, %v1685_v59 }
 0x764   : > { %v1628_v13 = vsel %vm1627_vm15, %v2026_v34, %v1624_v10 }
 0x765   : > { %v1889_v4 = vmul.f32 -1.442695, %v1687_v15  ;;  %v1629_v17 = vmul.f32 %v1628_v13, %v1608_v27 }
 0x767   : > { %2027 = vpow2.f32 %v1889_v4  ;;  %v1631_v60 = vmul.f32 %v1630_v47, %v1629_v17 }
 0x769   : > { %v1633_v11 = vadd.f32 %v1632_v54, %v1631_v60 }
 0x76d   : > { %v2028_v40 = vpop.eup %2027 }
 0x76e   : > { %v1691_v46 = vadd.f32 1.0, %v2028_v40 }
 0x770   : > { %2029 = vrcp.f32 %v1691_v46  ;;  %v1703_v49 = vand.u32 2147483648, %v1691_v46  ;;  %v1701_v56 = vand.u32 2147483647, %v1691_v46  ;;  %vm1697_vm2 = vweird.f32 %v1691_v46 }
 0x772   : > { %v1704_v9 = vor.u32 1.1754944e-38, %v1703_v49  ;;  %vm1702_vm4 = vcmp.eq.f32.partialorder %v1701_v56, 8.507059e+37 }
 0x776   : > { %v2030_v50 = vpop.eup %2029 }
 0x777   : > { %v1693_v53 = vmul.f32 %v2030_v50, %v1691_v46  ;;  %vm1698_vm0 = vweird.f32 %v2030_v50 }
 0x778   : > { %vm1699_vm3 = vmor %vm1697_vm2, %vm1698_vm0 }
 0x779   : > { %v1694_v58 = vsub.f32 1.0, %v1693_v53 }
 0x77b   : > { %v1695_v0 = vmul.f32 %v2030_v50, %v1694_v58 }
 0x77d   : > { %v1696_v8 = vadd.f32 %v2030_v50, %v1695_v0 }
 0x77f   : > { %v1700_v20 = vsel %vm1699_vm3, %v2030_v50, %v1696_v8 }
 0x780   : > { %v1705_v63 = vsel %vm1702_vm4, %v1704_v9, %v1700_v20 }
 0x781   : > { %v1707_v3 = vmul.f32 %v1705_v63, %v1633_v11 }
 0x783   : > { %v1708_v32 = vadd.f32 %v1707_v3, %v2845_v44 }
 0x785   : > { %v1709_v35 = vmul.f32 0.70710677, %v1708_v32 }
 0x787   : > { %v1714_v41 = vsel %vm2938_vm6, %v1709_v35, %v1712_v24 }
 0x788   : > { %1716 = vst.msk [vmem:[%s354_s23] sm:$0xff] %vm1715_vm5, %v1714_v41 }
 0x789   : > { %2148 = shalt.err (!%p2145_p10)
}
 0x78a   : > { %1904 = dma.vmem_to_hbm [thread:$0]  (%p2312_p4), %s1731_s10, 128, %s1733_s21, %s1718_s8  }
 0x78b PF: > { %s1744_s11 = sand.u32 1, %s2179_s24   ;;  %p2939_p13 = scmp.ge.s32.totalorder %s2191_s27, 2 }
 0x78c   : > { %s1745_s19 = scalar_lea.sflag [#allocation4], %s1744_s11 }
 0x78d   : > { %p1918_p11 = pnand %p2939_p13, %p2316_p6 }
 0x78f   : > { %p1919_p0 = pneg %p1918_p11 }
 0x791   : > { %2174 = dma.done.wait (%p1919_p0), %s1745_s19, 128  }
 0x792   : > { %2176 = vsyncadd (%p1919_p0), %s1745_s19, 4294967168  ;;  %p21_p2 = scmp.ge.s32.totalorder %s2286_s22, 4   ;;  %s2940_s24 = smov %s2183_s25 }
 0x793   : > { %s2941_s25 = smov %s2187_s26  ;;  %s2942_s26 = smov %s2297_s29 }
 0x794   : > { %s2943_s27 = smov %s2286_s22  ;;  %23 = sbr.rel (!%p21_p2) target bundleno = 9 (0x9), region = 113 }
 0x799   :  { %1751 = vsyncpa [#allocation3], 1 }
 0x79a   :  { %1753 = vsyncpa [#allocation3 + $0x1], 1 }
 0x79b   :  { %1754 = vsyncpa [#allocation6], 1 }
 0x79c   :  { %1755 = vsyncpa [#allocation4], 1 }
 0x79d   :  { %1757 = vsyncpa [#allocation4 + $0x1], 1 }

</bundles_post_ra>
